<compile_context>
chip_gen: v7x
topology: tpu7x:2x2x1
jax: 0.10.0
libtpu: 0.0.40
codegen_flags: <defaults>
</compile_context>

<pallas_src>
import math

import jax
import jax.numpy as jnp
from jax import lax
from jax.experimental import pallas as pl
from jax.experimental.pallas import tpu as pltpu

# ----------------------------- config ---------------------------------------
SEQ = 16
HIDDEN = 128
NUM_HEADS = 4
HEAD_DIM = HIDDEN // NUM_HEADS          # 32
HALF_DIM = HEAD_DIM // 2                # 16
NUM_KV_HEADS = 1                        # multi_query=True
Q_SIZE = NUM_HEADS * HEAD_DIM           # 128
KV_SIZE = NUM_KV_HEADS * HEAD_DIM       # 32
QKV_OUT = Q_SIZE + 2 * KV_SIZE          # 192
SCALE = 1.0 / math.sqrt(HEAD_DIM)       # inv_norm_factor
ROPE_THETA = 10000.0
MAX_POSITION = 2048
NEG_INF = -1e30


# ----------------------------- fused kernel ----------------------------------
def falcon_fused_kernel(x_ref, cos_ref, sin_ref, mask_ref,
                        wq_ref, bq_ref, wqr_ref, bqr_ref,
                        wk_ref, bk_ref, wkr_ref, bkr_ref,
                        wv_ref, bv_ref, wd_ref, o_ref):
    x = x_ref[...]                                                    # (T, 128)
    cos = cos_ref[...]                                                # (T, 32)
    sin = sin_ref[...]                                                # (T, 32)
    mask = mask_ref[...]                                              # (T, T) additive 0/-1e30

    # --- shared K/V projection (MQA: one kv head) + rotary on K --------------
    k = jnp.dot(x, wk_ref[...], preferred_element_type=jnp.float32) + bk_ref[...]    # (T, 32)
    kr = jnp.dot(x, wkr_ref[...], preferred_element_type=jnp.float32) + bkr_ref[...]  # rotate-half(K), from folded weights
    v = jnp.dot(x, wv_ref[...], preferred_element_type=jnp.float32) + bv_ref[...]    # (T, 32)
    k = k * cos + kr * sin                                            # NeoX RoPE, no lane shuffles

    # --- per-head: Q projection (+rot), scores, softmax, PV, dense slab ------
    acc = None
    for h in range(NUM_HEADS):                                        # static unrolled loop
        qh = jnp.dot(x, wq_ref[h], preferred_element_type=jnp.float32) + bq_ref[h]     # (T, 32), SCALE folded in
        qrh = jnp.dot(x, wqr_ref[h], preferred_element_type=jnp.float32) + bqr_ref[h]  # rotate-half(Q_h)
        qh = qh * cos + qrh * sin                                     # rotary

        # scores: contract last dims directly (no explicit k.T transpose)
        s = lax.dot_general(qh, k, (((1,), (1,)), ((), ())),
                            preferred_element_type=jnp.float32)       # (T, T)
        s = s + mask                                                  # additive causal mask
        m = jnp.max(s, axis=-1, keepdims=True)
        p = jnp.exp(s - m)
        l = jnp.sum(p, axis=-1, keepdims=True)
        o = jnp.dot(p, v, preferred_element_type=jnp.float32) / l     # (T, 32), exact normalization

        # distributed dense projection: accumulate o_h @ Wd_h, stays lane-dense (T, 128)
        contrib = jnp.dot(o, wd_ref[h], preferred_element_type=jnp.float32)
        acc = contrib if acc is None else acc + contrib

    o_ref[...] = acc


def _full_spec(shape):
    zeros = (0,) * len(shape)
    return pl.BlockSpec(shape, lambda i, _z=zeros: _z)


def _fused_call(x, cos_hd, sin_hd, mask, p):
    args = (x, cos_hd, sin_hd, mask,
            p["wq"], p["bq"], p["wqr"], p["bqr"],
            p["wk"], p["bk"], p["wkr"], p["bkr"],
            p["wv"], p["bv"], p["wd"])
    return pl.pallas_call(
        falcon_fused_kernel,
        out_shape=jax.ShapeDtypeStruct((SEQ, HIDDEN), jnp.float32),
        grid=(1,),
        in_specs=[_full_spec(a.shape) for a in args],
        out_specs=_full_spec((SEQ, HIDDEN)),
        compiler_params=pltpu.CompilerParams(dimension_semantics=("arbitrary",)),
    )(*args)


# ----------------------------- load-time weight / table prep ------------------
def prepare_params(w_qkv, b_qkv, w_dense):
    """One-time layout prep (outside the per-call traced path).

    torch-style [out, in] weights -> [in, out] slabs; rotate-half permutation,
    its sign, and the softmax SCALE all folded into weights/biases; rotary
    cos/sin LUT and the additive causal mask precomputed here as well.
    """
    w_qkv = jnp.asarray(w_qkv, jnp.float32)
    b_qkv = jnp.asarray(b_qkv, jnp.float32)
    w_dense = jnp.asarray(w_dense, jnp.float32)

    wq = w_qkv[:Q_SIZE]                         # (128, 128)  [out, in]
    wk = w_qkv[Q_SIZE:Q_SIZE + KV_SIZE]         # (32, 128)
    wv = w_qkv[Q_SIZE + KV_SIZE:]               # (32, 128)
    bq = b_qkv[:Q_SIZE]
    bk = b_qkv[Q_SIZE:Q_SIZE + KV_SIZE]
    bv = b_qkv[Q_SIZE + KV_SIZE:]

    # rotate_half folded into the projection: rot(x W^T + b) = x (rot W)^T + rot(b),
    # where rot([a, b]) = [-b, a] over the two halves of each head.
    wq_h = wq.reshape(NUM_HEADS, HEAD_DIM, HIDDEN)                    # (H, hd, in)
    bq_h = bq.reshape(NUM_HEADS, HEAD_DIM)
    wqr_h = jnp.concatenate([-wq_h[:, HALF_DIM:], wq_h[:, :HALF_DIM]], axis=1)
    bqr_h = jnp.concatenate([-bq_h[:, HALF_DIM:], bq_h[:, :HALF_DIM]], axis=1)
    wkr = jnp.concatenate([-wk[HALF_DIM:], wk[:HALF_DIM]], axis=0)
    bkr = jnp.concatenate([-bk[HALF_DIM:], bk[:HALF_DIM]], axis=0)

    params = {
        # SCALE folded into the Q projection (scaling commutes with rotation)
        "wq":  SCALE * jnp.transpose(wq_h, (0, 2, 1)),                # (H, 128, 32)
        "bq":  SCALE * bq_h.reshape(NUM_HEADS, 1, HEAD_DIM),          # (H, 1, 32)
        "wqr": SCALE * jnp.transpose(wqr_h, (0, 2, 1)),               # (H, 128, 32)
        "bqr": SCALE * bqr_h.reshape(NUM_HEADS, 1, HEAD_DIM),         # (H, 1, 32)
        "wk":  wk.T,  "bk":  bk.reshape(1, KV_SIZE),                  # (128, 32), (1, 32)
        "wkr": wkr.T, "bkr": bkr.reshape(1, KV_SIZE),
        "wv":  wv.T,  "bv":  bv.reshape(1, KV_SIZE),
        # dense (RowParallelLinear) weight as per-head [in, out] slabs
        "wd":  w_dense.T.reshape(NUM_HEADS, HEAD_DIM, HIDDEN),        # (H, 32, 128)
    }

    # rotary cos/sin LUT over MAX_POSITION, already expanded to head_dim width
    # ([cos|cos], [sin|sin]) so the kernel applies RoPE as two plain FMAs.
    inv_freq = 1.0 / (ROPE_THETA ** (
        jnp.arange(0, HEAD_DIM, 2, dtype=jnp.float32) / HEAD_DIM))    # (16,)
    t = jnp.arange(MAX_POSITION, dtype=jnp.float32)
    freqs = t[:, None] * inv_freq[None, :]                            # (MAX_POSITION, 16)
    params["cos_lut"] = jnp.concatenate([jnp.cos(freqs)] * 2, axis=-1)  # (MAX_POSITION, 32)
    params["sin_lut"] = jnp.concatenate([jnp.sin(freqs)] * 2, axis=-1)

    # additive causal mask (0 on/below diagonal, -1e30 above)
    causal = jnp.tril(jnp.ones((SEQ, SEQ), dtype=bool))
    params["mask"] = jnp.where(causal, 0.0, NEG_INF).astype(jnp.float32)
    return params


# ----------------------------- forward ---------------------------------------
@jax.jit
def falcon_attention_forward(positions, hidden_states, params, dense_bias):
    """Mirrors FalconAttention.forward (prefill, empty kv_cache, causal).
    Returns (attn_output, dense_bias) exactly like the module (skip_bias_add=True)."""
    # Single gather from the precomputed LUT -- no pow/cos/sin in the per-call path.
    cos_hd = params["cos_lut"][positions]                              # (T, 32)
    sin_hd = params["sin_lut"][positions]                              # (T, 32)
    out = _fused_call(hidden_states, cos_hd, sin_hd, params["mask"], params)
    return out, dense_bias


# ----------------------------- plain-JAX reference ----------------------------
def _reference(positions, x, w_qkv, b_qkv, w_dense, b_dense):
    qkv = x @ w_qkv.T + b_qkv
    q = qkv[:, :Q_SIZE].reshape(SEQ, NUM_HEADS, HEAD_DIM)
    k = qkv[:, Q_SIZE:Q_SIZE + KV_SIZE].reshape(SEQ, NUM_KV_HEADS, HEAD_DIM)
    v = qkv[:, Q_SIZE + KV_SIZE:].reshape(SEQ, NUM_KV_HEADS, HEAD_DIM)

    inv_freq = 1.0 / (ROPE_THETA ** (
        jnp.arange(0, HEAD_DIM, 2, dtype=jnp.float32) / HEAD_DIM))
    freqs = positions.astype(jnp.float32)[:, None] * inv_freq[None, :]
    cos = jnp.cos(freqs)[:, None, :]
    sin = jnp.sin(freqs)[:, None, :]

    def rope(t):
        t1, t2 = t[..., :HALF_DIM], t[..., HALF_DIM:]
        return jnp.concatenate([t1 * cos - t2 * sin, t2 * cos + t1 * sin], axis=-1)

    q, k = rope(q), rope(k)
    k = jnp.repeat(k, NUM_HEADS // NUM_KV_HEADS, axis=1)
    v = jnp.repeat(v, NUM_HEADS // NUM_KV_HEADS, axis=1)

    s = jnp.einsum("thd,shd->hts", q, k) * SCALE
    mask = jnp.tril(jnp.ones((SEQ, SEQ), dtype=bool))
    s = jnp.where(mask[None], s, -jnp.inf)
    p = jax.nn.softmax(s, axis=-1)
    o = jnp.einsum("hts,shd->thd", p, v).reshape(SEQ, HIDDEN)
    return o @ w_dense.T, b_dense


# ----------------------------- main -------------------------------------------
if __name__ == "__main__":
    key = jax.random.PRNGKey(0)
    k1, k2, k3, k4, k5 = jax.random.split(key, 5)
    w_qkv = jax.random.normal(k1, (QKV_OUT, HIDDEN), jnp.float32) * 0.02
    b_qkv = jax.random.normal(k2, (QKV_OUT,), jnp.float32) * 0.02
    w_dense = jax.random.normal(k3, (HIDDEN, HIDDEN), jnp.float32) * 0.02
    b_dense = jax.random.normal(k4, (HIDDEN,), jnp.float32) * 0.02

    hidden_states = jax.random.normal(k5, (SEQ, HIDDEN), jnp.float32)
    positions = jnp.arange(SEQ, dtype=jnp.int32)

    params = prepare_params(w_qkv, b_qkv, w_dense)   # load-time, not per-call

    out, out_bias = falcon_attention_forward(positions, hidden_states, params, b_dense)
    out = jax.block_until_ready(out)

    ref_out, ref_bias = _reference(
        positions, hidden_states, w_qkv, b_qkv, w_dense, b_dense)
    assert jnp.allclose(out, ref_out, atol=2e-4, rtol=2e-4), "mismatch vs reference"
    assert jnp.allclose(out_bias, ref_bias), "bias mismatch"

    print("KERNEL_OK")
</pallas_src>

<mosaic_0001>
module attributes {stable_mosaic.version = 11 : i64} {
  func.func @falcon_fused_kernel(%arg0: i32, %arg1: memref<16x128xf32, #tpu.memory_space<vmem>>, %arg2: memref<16x32xf32, #tpu.memory_space<vmem>>, %arg3: memref<16x32xf32, #tpu.memory_space<vmem>>, %arg4: memref<16x16xf32, #tpu.memory_space<vmem>>, %arg5: memref<4x128x32xf32, #tpu.memory_space<vmem>>, %arg6: memref<4x1x32xf32, #tpu.memory_space<vmem>>, %arg7: memref<4x128x32xf32, #tpu.memory_space<vmem>>, %arg8: memref<4x1x32xf32, #tpu.memory_space<vmem>>, %arg9: memref<128x32xf32, #tpu.memory_space<vmem>>, %arg10: memref<1x32xf32, #tpu.memory_space<vmem>>, %arg11: memref<128x32xf32, #tpu.memory_space<vmem>>, %arg12: memref<1x32xf32, #tpu.memory_space<vmem>>, %arg13: memref<128x32xf32, #tpu.memory_space<vmem>>, %arg14: memref<1x32xf32, #tpu.memory_space<vmem>>, %arg15: memref<4x32x128xf32, #tpu.memory_space<vmem>>, %arg16: memref<16x128xf32, #tpu.memory_space<vmem>>) attributes {dimension_semantics = [#tpu.dimension_semantics<arbitrary>], iteration_bounds = array<i64: 1>, scalar_prefetch = 0 : i64, scratch_operands = 0 : i64, tpu.core_type = #tpu.core_type<tc>, window_params = [{pipeline_mode = #tpu.pipeline_mode<synchronous>, transform_indices = @transform_0, window_bounds = array<i64: 16, 128>}, {pipeline_mode = #tpu.pipeline_mode<synchronous>, transform_indices = @transform_1, window_bounds = array<i64: 16, 32>}, {pipeline_mode = #tpu.pipeline_mode<synchronous>, transform_indices = @transform_2, window_bounds = array<i64: 16, 32>}, {pipeline_mode = #tpu.pipeline_mode<synchronous>, transform_indices = @transform_3, window_bounds = array<i64: 16, 16>}, {pipeline_mode = #tpu.pipeline_mode<synchronous>, transform_indices = @transform_4, window_bounds = array<i64: 4, 128, 32>}, {pipeline_mode = #tpu.pipeline_mode<synchronous>, transform_indices = @transform_5, window_bounds = array<i64: 4, 1, 32>}, {pipeline_mode = #tpu.pipeline_mode<synchronous>, transform_indices = @transform_6, window_bounds = array<i64: 4, 128, 32>}, {pipeline_mode = #tpu.pipeline_mode<synchronous>, transform_indices = @transform_7, window_bounds = array<i64: 4, 1, 32>}, {pipeline_mode = #tpu.pipeline_mode<synchronous>, transform_indices = @transform_8, window_bounds = array<i64: 128, 32>}, {pipeline_mode = #tpu.pipeline_mode<synchronous>, transform_indices = @transform_9, window_bounds = array<i64: 1, 32>}, {pipeline_mode = #tpu.pipeline_mode<synchronous>, transform_indices = @transform_10, window_bounds = array<i64: 128, 32>}, {pipeline_mode = #tpu.pipeline_mode<synchronous>, transform_indices = @transform_11, window_bounds = array<i64: 1, 32>}, {pipeline_mode = #tpu.pipeline_mode<synchronous>, transform_indices = @transform_12, window_bounds = array<i64: 128, 32>}, {pipeline_mode = #tpu.pipeline_mode<synchronous>, transform_indices = @transform_13, window_bounds = array<i64: 1, 32>}, {pipeline_mode = #tpu.pipeline_mode<synchronous>, transform_indices = @transform_14, window_bounds = array<i64: 4, 32, 128>}, {pipeline_mode = #tpu.pipeline_mode<synchronous>, transform_indices = @transform_15, window_bounds = array<i64: 16, 128>}]} {
    %c0 = arith.constant 0 : index
    %c0_0 = arith.constant 0 : index
    %0 = vector.load %arg1[%c0, %c0_0] : memref<16x128xf32, #tpu.memory_space<vmem>>, vector<16x128xf32>
    %c0_1 = arith.constant 0 : index
    %c0_2 = arith.constant 0 : index
    %1 = vector.load %arg2[%c0_1, %c0_2] : memref<16x32xf32, #tpu.memory_space<vmem>>, vector<16x32xf32>
    %c0_3 = arith.constant 0 : index
    %c0_4 = arith.constant 0 : index
    %2 = vector.load %arg3[%c0_3, %c0_4] : memref<16x32xf32, #tpu.memory_space<vmem>>, vector<16x32xf32>
    %c0_5 = arith.constant 0 : index
    %c0_6 = arith.constant 0 : index
    %3 = vector.load %arg4[%c0_5, %c0_6] : memref<16x16xf32, #tpu.memory_space<vmem>>, vector<16x16xf32>
    %c0_7 = arith.constant 0 : index
    %c0_8 = arith.constant 0 : index
    %4 = vector.load %arg9[%c0_7, %c0_8] : memref<128x32xf32, #tpu.memory_space<vmem>>, vector<128x32xf32>
    %cst = arith.constant dense<0.000000e+00> : vector<16x32xf32>
    %5 = tpu.matmul %0, %4, %cst {dimension_numbers = #tpu.dot_dimension_numbers<[1], [0], [0], [1], [0, 0, 1, 1], [], []>} : vector<16x128xf32>, vector<128x32xf32>, vector<16x32xf32> -> vector<16x32xf32>
    %c0_9 = arith.constant 0 : index
    %c0_10 = arith.constant 0 : index
    %6 = vector.load %arg10[%c0_9, %c0_10] : memref<1x32xf32, #tpu.memory_space<vmem>>, vector<1x32xf32>
    %7 = vector.broadcast %6 : vector<1x32xf32> to vector<16x32xf32>
    %8 = arith.addf %5, %7 : vector<16x32xf32>
    %c0_11 = arith.constant 0 : index
    %c0_12 = arith.constant 0 : index
    %9 = vector.load %arg11[%c0_11, %c0_12] : memref<128x32xf32, #tpu.memory_space<vmem>>, vector<128x32xf32>
    %cst_13 = arith.constant dense<0.000000e+00> : vector<16x32xf32>
    %10 = tpu.matmul %0, %9, %cst_13 {dimension_numbers = #tpu.dot_dimension_numbers<[1], [0], [0], [1], [0, 0, 1, 1], [], []>} : vector<16x128xf32>, vector<128x32xf32>, vector<16x32xf32> -> vector<16x32xf32>
    %c0_14 = arith.constant 0 : index
    %c0_15 = arith.constant 0 : index
    %11 = vector.load %arg12[%c0_14, %c0_15] : memref<1x32xf32, #tpu.memory_space<vmem>>, vector<1x32xf32>
    %12 = vector.broadcast %11 : vector<1x32xf32> to vector<16x32xf32>
    %13 = arith.addf %10, %12 : vector<16x32xf32>
    %c0_16 = arith.constant 0 : index
    %c0_17 = arith.constant 0 : index
    %14 = vector.load %arg13[%c0_16, %c0_17] : memref<128x32xf32, #tpu.memory_space<vmem>>, vector<128x32xf32>
    %cst_18 = arith.constant dense<0.000000e+00> : vector<16x32xf32>
    %15 = tpu.matmul %0, %14, %cst_18 {dimension_numbers = #tpu.dot_dimension_numbers<[1], [0], [0], [1], [0, 0, 1, 1], [], []>} : vector<16x128xf32>, vector<128x32xf32>, vector<16x32xf32> -> vector<16x32xf32>
    %c0_19 = arith.constant 0 : index
    %c0_20 = arith.constant 0 : index
    %16 = vector.load %arg14[%c0_19, %c0_20] : memref<1x32xf32, #tpu.memory_space<vmem>>, vector<1x32xf32>
    %17 = vector.broadcast %16 : vector<1x32xf32> to vector<16x32xf32>
    %18 = arith.addf %15, %17 : vector<16x32xf32>
    %19 = arith.mulf %8, %1 : vector<16x32xf32>
    %20 = arith.mulf %13, %2 : vector<16x32xf32>
    %21 = arith.addf %19, %20 : vector<16x32xf32>
    %c0_21 = arith.constant 0 : index
    %c0_22 = arith.constant 0 : index
    %c0_23 = arith.constant 0 : index
    %22 = vector.load %arg5[%c0_21, %c0_22, %c0_23] : memref<4x128x32xf32, #tpu.memory_space<vmem>>, vector<1x128x32xf32>
    %23 = vector.shape_cast %22 : vector<1x128x32xf32> to vector<128x32xf32>
    %cst_24 = arith.constant dense<0.000000e+00> : vector<16x32xf32>
    %24 = tpu.matmul %0, %23, %cst_24 {dimension_numbers = #tpu.dot_dimension_numbers<[1], [0], [0], [1], [0, 0, 1, 1], [], []>} : vector<16x128xf32>, vector<128x32xf32>, vector<16x32xf32> -> vector<16x32xf32>
    %c0_25 = arith.constant 0 : index
    %c0_26 = arith.constant 0 : index
    %c0_27 = arith.constant 0 : index
    %25 = vector.load %arg6[%c0_25, %c0_26, %c0_27] : memref<4x1x32xf32, #tpu.memory_space<vmem>>, vector<1x1x32xf32>
    %26 = vector.shape_cast %25 : vector<1x1x32xf32> to vector<1x32xf32>
    %27 = vector.broadcast %26 : vector<1x32xf32> to vector<16x32xf32>
    %28 = arith.addf %24, %27 : vector<16x32xf32>
    %c0_28 = arith.constant 0 : index
    %c0_29 = arith.constant 0 : index
    %c0_30 = arith.constant 0 : index
    %29 = vector.load %arg7[%c0_28, %c0_29, %c0_30] : memref<4x128x32xf32, #tpu.memory_space<vmem>>, vector<1x128x32xf32>
    %30 = vector.shape_cast %29 : vector<1x128x32xf32> to vector<128x32xf32>
    %cst_31 = arith.constant dense<0.000000e+00> : vector<16x32xf32>
    %31 = tpu.matmul %0, %30, %cst_31 {dimension_numbers = #tpu.dot_dimension_numbers<[1], [0], [0], [1], [0, 0, 1, 1], [], []>} : vector<16x128xf32>, vector<128x32xf32>, vector<16x32xf32> -> vector<16x32xf32>
    %c0_32 = arith.constant 0 : index
    %c0_33 = arith.constant 0 : index
    %c0_34 = arith.constant 0 : index
    %32 = vector.load %arg8[%c0_32, %c0_33, %c0_34] : memref<4x1x32xf32, #tpu.memory_space<vmem>>, vector<1x1x32xf32>
    %33 = vector.shape_cast %32 : vector<1x1x32xf32> to vector<1x32xf32>
    %34 = vector.broadcast %33 : vector<1x32xf32> to vector<16x32xf32>
    %35 = arith.addf %31, %34 : vector<16x32xf32>
    %36 = arith.mulf %28, %1 : vector<16x32xf32>
    %37 = arith.mulf %35, %2 : vector<16x32xf32>
    %38 = arith.addf %36, %37 : vector<16x32xf32>
    %cst_35 = arith.constant dense<0.000000e+00> : vector<16x16xf32>
    %39 = tpu.matmul %38, %21, %cst_35 {dimension_numbers = #tpu.dot_dimension_numbers<[1], [1], [0], [0], [0, 0, 1, 0], [], []>} : vector<16x32xf32>, vector<16x32xf32>, vector<16x16xf32> -> vector<16x16xf32>
    %40 = arith.addf %39, %3 : vector<16x16xf32>
    %cst_36 = arith.constant dense<0xFF800000> : vector<16xf32>
    %41 = vector.multi_reduction <maximumf>, %40, %cst_36 [1] : vector<16x16xf32> to vector<16xf32>
    %42 = vector.shape_cast %41 : vector<16xf32> to vector<16x1xf32>
    %43 = vector.broadcast %42 : vector<16x1xf32> to vector<16x16xf32>
    %44 = arith.subf %40, %43 : vector<16x16xf32>
    %45 = math.exp %44 : vector<16x16xf32>
    %cst_37 = arith.constant dense<0.000000e+00> : vector<16xf32>
    %46 = vector.multi_reduction <add>, %45, %cst_37 [1] : vector<16x16xf32> to vector<16xf32>
    %47 = vector.shape_cast %46 : vector<16xf32> to vector<16x1xf32>
    %cst_38 = arith.constant dense<0.000000e+00> : vector<16x32xf32>
    %48 = tpu.matmul %45, %18, %cst_38 {dimension_numbers = #tpu.dot_dimension_numbers<[1], [0], [0], [1], [0, 0, 1, 1], [], []>} : vector<16x16xf32>, vector<16x32xf32>, vector<16x32xf32> -> vector<16x32xf32>
    %49 = vector.broadcast %47 : vector<16x1xf32> to vector<16x32xf32>
    %50 = arith.divf %48, %49 : vector<16x32xf32>
    %c0_39 = arith.constant 0 : index
    %c0_40 = arith.constant 0 : index
    %c0_41 = arith.constant 0 : index
    %51 = vector.load %arg15[%c0_39, %c0_40, %c0_41] : memref<4x32x128xf32, #tpu.memory_space<vmem>>, vector<1x32x128xf32>
    %52 = vector.shape_cast %51 : vector<1x32x128xf32> to vector<32x128xf32>
    %cst_42 = arith.constant dense<0.000000e+00> : vector<16x128xf32>
    %53 = tpu.matmul %50, %52, %cst_42 {dimension_numbers = #tpu.dot_dimension_numbers<[1], [0], [0], [1], [0, 0, 1, 1], [], []>} : vector<16x32xf32>, vector<32x128xf32>, vector<16x128xf32> -> vector<16x128xf32>
    %c1 = arith.constant 1 : index
    %c0_43 = arith.constant 0 : index
    %c0_44 = arith.constant 0 : index
    %54 = vector.load %arg5[%c1, %c0_43, %c0_44] : memref<4x128x32xf32, #tpu.memory_space<vmem>>, vector<1x128x32xf32>
    %55 = vector.shape_cast %54 : vector<1x128x32xf32> to vector<128x32xf32>
    %cst_45 = arith.constant dense<0.000000e+00> : vector<16x32xf32>
    %56 = tpu.matmul %0, %55, %cst_45 {dimension_numbers = #tpu.dot_dimension_numbers<[1], [0], [0], [1], [0, 0, 1, 1], [], []>} : vector<16x128xf32>, vector<128x32xf32>, vector<16x32xf32> -> vector<16x32xf32>
    %c1_46 = arith.constant 1 : index
    %c0_47 = arith.constant 0 : index
    %c0_48 = arith.constant 0 : index
    %57 = vector.load %arg6[%c1_46, %c0_47, %c0_48] : memref<4x1x32xf32, #tpu.memory_space<vmem>>, vector<1x1x32xf32>
    %58 = vector.shape_cast %57 : vector<1x1x32xf32> to vector<1x32xf32>
    %59 = vector.broadcast %58 : vector<1x32xf32> to vector<16x32xf32>
    %60 = arith.addf %56, %59 : vector<16x32xf32>
    %c1_49 = arith.constant 1 : index
    %c0_50 = arith.constant 0 : index
    %c0_51 = arith.constant 0 : index
    %61 = vector.load %arg7[%c1_49, %c0_50, %c0_51] : memref<4x128x32xf32, #tpu.memory_space<vmem>>, vector<1x128x32xf32>
    %62 = vector.shape_cast %61 : vector<1x128x32xf32> to vector<128x32xf32>
    %cst_52 = arith.constant dense<0.000000e+00> : vector<16x32xf32>
    %63 = tpu.matmul %0, %62, %cst_52 {dimension_numbers = #tpu.dot_dimension_numbers<[1], [0], [0], [1], [0, 0, 1, 1], [], []>} : vector<16x128xf32>, vector<128x32xf32>, vector<16x32xf32> -> vector<16x32xf32>
    %c1_53 = arith.constant 1 : index
    %c0_54 = arith.constant 0 : index
    %c0_55 = arith.constant 0 : index
    %64 = vector.load %arg8[%c1_53, %c0_54, %c0_55] : memref<4x1x32xf32, #tpu.memory_space<vmem>>, vector<1x1x32xf32>
    %65 = vector.shape_cast %64 : vector<1x1x32xf32> to vector<1x32xf32>
    %66 = vector.broadcast %65 : vector<1x32xf32> to vector<16x32xf32>
    %67 = arith.addf %63, %66 : vector<16x32xf32>
    %68 = arith.mulf %60, %1 : vector<16x32xf32>
    %69 = arith.mulf %67, %2 : vector<16x32xf32>
    %70 = arith.addf %68, %69 : vector<16x32xf32>
    %cst_56 = arith.constant dense<0.000000e+00> : vector<16x16xf32>
    %71 = tpu.matmul %70, %21, %cst_56 {dimension_numbers = #tpu.dot_dimension_numbers<[1], [1], [0], [0], [0, 0, 1, 0], [], []>} : vector<16x32xf32>, vector<16x32xf32>, vector<16x16xf32> -> vector<16x16xf32>
    %72 = arith.addf %71, %3 : vector<16x16xf32>
    %cst_57 = arith.constant dense<0xFF800000> : vector<16xf32>
    %73 = vector.multi_reduction <maximumf>, %72, %cst_57 [1] : vector<16x16xf32> to vector<16xf32>
    %74 = vector.shape_cast %73 : vector<16xf32> to vector<16x1xf32>
    %75 = vector.broadcast %74 : vector<16x1xf32> to vector<16x16xf32>
    %76 = arith.subf %72, %75 : vector<16x16xf32>
    %77 = math.exp %76 : vector<16x16xf32>
    %cst_58 = arith.constant dense<0.000000e+00> : vector<16xf32>
    %78 = vector.multi_reduction <add>, %77, %cst_58 [1] : vector<16x16xf32> to vector<16xf32>
    %79 = vector.shape_cast %78 : vector<16xf32> to vector<16x1xf32>
    %cst_59 = arith.constant dense<0.000000e+00> : vector<16x32xf32>
    %80 = tpu.matmul %77, %18, %cst_59 {dimension_numbers = #tpu.dot_dimension_numbers<[1], [0], [0], [1], [0, 0, 1, 1], [], []>} : vector<16x16xf32>, vector<16x32xf32>, vector<16x32xf32> -> vector<16x32xf32>
    %81 = vector.broadcast %79 : vector<16x1xf32> to vector<16x32xf32>
    %82 = arith.divf %80, %81 : vector<16x32xf32>
    %c1_60 = arith.constant 1 : index
    %c0_61 = arith.constant 0 : index
    %c0_62 = arith.constant 0 : index
    %83 = vector.load %arg15[%c1_60, %c0_61, %c0_62] : memref<4x32x128xf32, #tpu.memory_space<vmem>>, vector<1x32x128xf32>
    %84 = vector.shape_cast %83 : vector<1x32x128xf32> to vector<32x128xf32>
    %cst_63 = arith.constant dense<0.000000e+00> : vector<16x128xf32>
    %85 = tpu.matmul %82, %84, %cst_63 {dimension_numbers = #tpu.dot_dimension_numbers<[1], [0], [0], [1], [0, 0, 1, 1], [], []>} : vector<16x32xf32>, vector<32x128xf32>, vector<16x128xf32> -> vector<16x128xf32>
    %86 = arith.addf %53, %85 : vector<16x128xf32>
    %c2 = arith.constant 2 : index
    %c0_64 = arith.constant 0 : index
    %c0_65 = arith.constant 0 : index
    %87 = vector.load %arg5[%c2, %c0_64, %c0_65] : memref<4x128x32xf32, #tpu.memory_space<vmem>>, vector<1x128x32xf32>
    %88 = vector.shape_cast %87 : vector<1x128x32xf32> to vector<128x32xf32>
    %cst_66 = arith.constant dense<0.000000e+00> : vector<16x32xf32>
    %89 = tpu.matmul %0, %88, %cst_66 {dimension_numbers = #tpu.dot_dimension_numbers<[1], [0], [0], [1], [0, 0, 1, 1], [], []>} : vector<16x128xf32>, vector<128x32xf32>, vector<16x32xf32> -> vector<16x32xf32>
    %c2_67 = arith.constant 2 : index
    %c0_68 = arith.constant 0 : index
    %c0_69 = arith.constant 0 : index
    %90 = vector.load %arg6[%c2_67, %c0_68, %c0_69] : memref<4x1x32xf32, #tpu.memory_space<vmem>>, vector<1x1x32xf32>
    %91 = vector.shape_cast %90 : vector<1x1x32xf32> to vector<1x32xf32>
    %92 = vector.broadcast %91 : vector<1x32xf32> to vector<16x32xf32>
    %93 = arith.addf %89, %92 : vector<16x32xf32>
    %c2_70 = arith.constant 2 : index
    %c0_71 = arith.constant 0 : index
    %c0_72 = arith.constant 0 : index
    %94 = vector.load %arg7[%c2_70, %c0_71, %c0_72] : memref<4x128x32xf32, #tpu.memory_space<vmem>>, vector<1x128x32xf32>
    %95 = vector.shape_cast %94 : vector<1x128x32xf32> to vector<128x32xf32>
    %cst_73 = arith.constant dense<0.000000e+00> : vector<16x32xf32>
    %96 = tpu.matmul %0, %95, %cst_73 {dimension_numbers = #tpu.dot_dimension_numbers<[1], [0], [0], [1], [0, 0, 1, 1], [], []>} : vector<16x128xf32>, vector<128x32xf32>, vector<16x32xf32> -> vector<16x32xf32>
    %c2_74 = arith.constant 2 : index
    %c0_75 = arith.constant 0 : index
    %c0_76 = arith.constant 0 : index
    %97 = vector.load %arg8[%c2_74, %c0_75, %c0_76] : memref<4x1x32xf32, #tpu.memory_space<vmem>>, vector<1x1x32xf32>
    %98 = vector.shape_cast %97 : vector<1x1x32xf32> to vector<1x32xf32>
    %99 = vector.broadcast %98 : vector<1x32xf32> to vector<16x32xf32>
    %100 = arith.addf %96, %99 : vector<16x32xf32>
    %101 = arith.mulf %93, %1 : vector<16x32xf32>
    %102 = arith.mulf %100, %2 : vector<16x32xf32>
    %103 = arith.addf %101, %102 : vector<16x32xf32>
    %cst_77 = arith.constant dense<0.000000e+00> : vector<16x16xf32>
    %104 = tpu.matmul %103, %21, %cst_77 {dimension_numbers = #tpu.dot_dimension_numbers<[1], [1], [0], [0], [0, 0, 1, 0], [], []>} : vector<16x32xf32>, vector<16x32xf32>, vector<16x16xf32> -> vector<16x16xf32>
    %105 = arith.addf %104, %3 : vector<16x16xf32>
    %cst_78 = arith.constant dense<0xFF800000> : vector<16xf32>
    %106 = vector.multi_reduction <maximumf>, %105, %cst_78 [1] : vector<16x16xf32> to vector<16xf32>
    %107 = vector.shape_cast %106 : vector<16xf32> to vector<16x1xf32>
    %108 = vector.broadcast %107 : vector<16x1xf32> to vector<16x16xf32>
    %109 = arith.subf %105, %108 : vector<16x16xf32>
    %110 = math.exp %109 : vector<16x16xf32>
    %cst_79 = arith.constant dense<0.000000e+00> : vector<16xf32>
    %111 = vector.multi_reduction <add>, %110, %cst_79 [1] : vector<16x16xf32> to vector<16xf32>
    %112 = vector.shape_cast %111 : vector<16xf32> to vector<16x1xf32>
    %cst_80 = arith.constant dense<0.000000e+00> : vector<16x32xf32>
    %113 = tpu.matmul %110, %18, %cst_80 {dimension_numbers = #tpu.dot_dimension_numbers<[1], [0], [0], [1], [0, 0, 1, 1], [], []>} : vector<16x16xf32>, vector<16x32xf32>, vector<16x32xf32> -> vector<16x32xf32>
    %114 = vector.broadcast %112 : vector<16x1xf32> to vector<16x32xf32>
    %115 = arith.divf %113, %114 : vector<16x32xf32>
    %c2_81 = arith.constant 2 : index
    %c0_82 = arith.constant 0 : index
    %c0_83 = arith.constant 0 : index
    %116 = vector.load %arg15[%c2_81, %c0_82, %c0_83] : memref<4x32x128xf32, #tpu.memory_space<vmem>>, vector<1x32x128xf32>
    %117 = vector.shape_cast %116 : vector<1x32x128xf32> to vector<32x128xf32>
    %cst_84 = arith.constant dense<0.000000e+00> : vector<16x128xf32>
    %118 = tpu.matmul %115, %117, %cst_84 {dimension_numbers = #tpu.dot_dimension_numbers<[1], [0], [0], [1], [0, 0, 1, 1], [], []>} : vector<16x32xf32>, vector<32x128xf32>, vector<16x128xf32> -> vector<16x128xf32>
    %119 = arith.addf %86, %118 : vector<16x128xf32>
    %c3 = arith.constant 3 : index
    %c0_85 = arith.constant 0 : index
    %c0_86 = arith.constant 0 : index
    %120 = vector.load %arg5[%c3, %c0_85, %c0_86] : memref<4x128x32xf32, #tpu.memory_space<vmem>>, vector<1x128x32xf32>
    %121 = vector.shape_cast %120 : vector<1x128x32xf32> to vector<128x32xf32>
    %cst_87 = arith.constant dense<0.000000e+00> : vector<16x32xf32>
    %122 = tpu.matmul %0, %121, %cst_87 {dimension_numbers = #tpu.dot_dimension_numbers<[1], [0], [0], [1], [0, 0, 1, 1], [], []>} : vector<16x128xf32>, vector<128x32xf32>, vector<16x32xf32> -> vector<16x32xf32>
    %c3_88 = arith.constant 3 : index
    %c0_89 = arith.constant 0 : index
    %c0_90 = arith.constant 0 : index
    %123 = vector.load %arg6[%c3_88, %c0_89, %c0_90] : memref<4x1x32xf32, #tpu.memory_space<vmem>>, vector<1x1x32xf32>
    %124 = vector.shape_cast %123 : vector<1x1x32xf32> to vector<1x32xf32>
    %125 = vector.broadcast %124 : vector<1x32xf32> to vector<16x32xf32>
    %126 = arith.addf %122, %125 : vector<16x32xf32>
    %c3_91 = arith.constant 3 : index
    %c0_92 = arith.constant 0 : index
    %c0_93 = arith.constant 0 : index
    %127 = vector.load %arg7[%c3_91, %c0_92, %c0_93] : memref<4x128x32xf32, #tpu.memory_space<vmem>>, vector<1x128x32xf32>
    %128 = vector.shape_cast %127 : vector<1x128x32xf32> to vector<128x32xf32>
    %cst_94 = arith.constant dense<0.000000e+00> : vector<16x32xf32>
    %129 = tpu.matmul %0, %128, %cst_94 {dimension_numbers = #tpu.dot_dimension_numbers<[1], [0], [0], [1], [0, 0, 1, 1], [], []>} : vector<16x128xf32>, vector<128x32xf32>, vector<16x32xf32> -> vector<16x32xf32>
    %c3_95 = arith.constant 3 : index
    %c0_96 = arith.constant 0 : index
    %c0_97 = arith.constant 0 : index
    %130 = vector.load %arg8[%c3_95, %c0_96, %c0_97] : memref<4x1x32xf32, #tpu.memory_space<vmem>>, vector<1x1x32xf32>
    %131 = vector.shape_cast %130 : vector<1x1x32xf32> to vector<1x32xf32>
    %132 = vector.broadcast %131 : vector<1x32xf32> to vector<16x32xf32>
    %133 = arith.addf %129, %132 : vector<16x32xf32>
    %134 = arith.mulf %126, %1 : vector<16x32xf32>
    %135 = arith.mulf %133, %2 : vector<16x32xf32>
    %136 = arith.addf %134, %135 : vector<16x32xf32>
    %cst_98 = arith.constant dense<0.000000e+00> : vector<16x16xf32>
    %137 = tpu.matmul %136, %21, %cst_98 {dimension_numbers = #tpu.dot_dimension_numbers<[1], [1], [0], [0], [0, 0, 1, 0], [], []>} : vector<16x32xf32>, vector<16x32xf32>, vector<16x16xf32> -> vector<16x16xf32>
    %138 = arith.addf %137, %3 : vector<16x16xf32>
    %cst_99 = arith.constant dense<0xFF800000> : vector<16xf32>
    %139 = vector.multi_reduction <maximumf>, %138, %cst_99 [1] : vector<16x16xf32> to vector<16xf32>
    %140 = vector.shape_cast %139 : vector<16xf32> to vector<16x1xf32>
    %141 = vector.broadcast %140 : vector<16x1xf32> to vector<16x16xf32>
    %142 = arith.subf %138, %141 : vector<16x16xf32>
    %143 = math.exp %142 : vector<16x16xf32>
    %cst_100 = arith.constant dense<0.000000e+00> : vector<16xf32>
    %144 = vector.multi_reduction <add>, %143, %cst_100 [1] : vector<16x16xf32> to vector<16xf32>
    %145 = vector.shape_cast %144 : vector<16xf32> to vector<16x1xf32>
    %cst_101 = arith.constant dense<0.000000e+00> : vector<16x32xf32>
    %146 = tpu.matmul %143, %18, %cst_101 {dimension_numbers = #tpu.dot_dimension_numbers<[1], [0], [0], [1], [0, 0, 1, 1], [], []>} : vector<16x16xf32>, vector<16x32xf32>, vector<16x32xf32> -> vector<16x32xf32>
    %147 = vector.broadcast %145 : vector<16x1xf32> to vector<16x32xf32>
    %148 = arith.divf %146, %147 : vector<16x32xf32>
    %c3_102 = arith.constant 3 : index
    %c0_103 = arith.constant 0 : index
    %c0_104 = arith.constant 0 : index
    %149 = vector.load %arg15[%c3_102, %c0_103, %c0_104] : memref<4x32x128xf32, #tpu.memory_space<vmem>>, vector<1x32x128xf32>
    %150 = vector.shape_cast %149 : vector<1x32x128xf32> to vector<32x128xf32>
    %cst_105 = arith.constant dense<0.000000e+00> : vector<16x128xf32>
    %151 = tpu.matmul %148, %150, %cst_105 {dimension_numbers = #tpu.dot_dimension_numbers<[1], [0], [0], [1], [0, 0, 1, 1], [], []>} : vector<16x32xf32>, vector<32x128xf32>, vector<16x128xf32> -> vector<16x128xf32>
    %152 = arith.addf %119, %151 : vector<16x128xf32>
    %c0_106 = arith.constant 0 : index
    %c0_107 = arith.constant 0 : index
    %153 = vector.load %arg16[%c0_106, %c0_107] : memref<16x128xf32, #tpu.memory_space<vmem>>, vector<16x128xf32>
    tpu.vector_store %arg16[%c0_106, %c0_107], %152 {strides = array<i32>} : memref<16x128xf32, #tpu.memory_space<vmem>>, vector<16x128xf32>,
    return
  }
  func.func @transform_0(%arg0: i32) -> (i32, i32) {
    %c0_i32 = arith.constant 0 : i32
    %c0_i32_0 = arith.constant 0 : i32
    %c0_i32_1 = arith.constant 0 : i32
    return %c0_i32, %c0_i32_0 : i32, i32
  }
  func.func @transform_1(%arg0: i32) -> (i32, i32) {
    %c0_i32 = arith.constant 0 : i32
    %c0_i32_0 = arith.constant 0 : i32
    %c0_i32_1 = arith.constant 0 : i32
    return %c0_i32, %c0_i32_0 : i32, i32
  }
  func.func @transform_2(%arg0: i32) -> (i32, i32) {
    %c0_i32 = arith.constant 0 : i32
    %c0_i32_0 = arith.constant 0 : i32
    %c0_i32_1 = arith.constant 0 : i32
    return %c0_i32, %c0_i32_0 : i32, i32
  }
  func.func @transform_3(%arg0: i32) -> (i32, i32) {
    %c0_i32 = arith.constant 0 : i32
    %c0_i32_0 = arith.constant 0 : i32
    %c0_i32_1 = arith.constant 0 : i32
    return %c0_i32, %c0_i32_0 : i32, i32
  }
  func.func @transform_4(%arg0: i32) -> (i32, i32, i32) {
    %c0_i32 = arith.constant 0 : i32
    %c0_i32_0 = arith.constant 0 : i32
    %c0_i32_1 = arith.constant 0 : i32
    %c0_i32_2 = arith.constant 0 : i32
    return %c0_i32, %c0_i32_0, %c0_i32_1 : i32, i32, i32
  }
  func.func @transform_5(%arg0: i32) -> (i32, i32, i32) {
    %c0_i32 = arith.constant 0 : i32
    %c0_i32_0 = arith.constant 0 : i32
    %c0_i32_1 = arith.constant 0 : i32
    %c0_i32_2 = arith.constant 0 : i32
    return %c0_i32, %c0_i32_0, %c0_i32_1 : i32, i32, i32
  }
  func.func @transform_6(%arg0: i32) -> (i32, i32, i32) {
    %c0_i32 = arith.constant 0 : i32
    %c0_i32_0 = arith.constant 0 : i32
    %c0_i32_1 = arith.constant 0 : i32
    %c0_i32_2 = arith.constant 0 : i32
    return %c0_i32, %c0_i32_0, %c0_i32_1 : i32, i32, i32
  }
  func.func @transform_7(%arg0: i32) -> (i32, i32, i32) {
    %c0_i32 = arith.constant 0 : i32
    %c0_i32_0 = arith.constant 0 : i32
    %c0_i32_1 = arith.constant 0 : i32
    %c0_i32_2 = arith.constant 0 : i32
    return %c0_i32, %c0_i32_0, %c0_i32_1 : i32, i32, i32
  }
  func.func @transform_8(%arg0: i32) -> (i32, i32) {
    %c0_i32 = arith.constant 0 : i32
    %c0_i32_0 = arith.constant 0 : i32
    %c0_i32_1 = arith.constant 0 : i32
    return %c0_i32, %c0_i32_0 : i32, i32
  }
  func.func @transform_9(%arg0: i32) -> (i32, i32) {
    %c0_i32 = arith.constant 0 : i32
    %c0_i32_0 = arith.constant 0 : i32
    %c0_i32_1 = arith.constant 0 : i32
    return %c0_i32, %c0_i32_0 : i32, i32
  }
  func.func @transform_10(%arg0: i32) -> (i32, i32) {
    %c0_i32 = arith.constant 0 : i32
    %c0_i32_0 = arith.constant 0 : i32
    %c0_i32_1 = arith.constant 0 : i32
    return %c0_i32, %c0_i32_0 : i32, i32
  }
  func.func @transform_11(%arg0: i32) -> (i32, i32) {
    %c0_i32 = arith.constant 0 : i32
    %c0_i32_0 = arith.constant 0 : i32
    %c0_i32_1 = arith.constant 0 : i32
    return %c0_i32, %c0_i32_0 : i32, i32
  }
  func.func @transform_12(%arg0: i32) -> (i32, i32) {
    %c0_i32 = arith.constant 0 : i32
    %c0_i32_0 = arith.constant 0 : i32
    %c0_i32_1 = arith.constant 0 : i32
    return %c0_i32, %c0_i32_0 : i32, i32
  }
  func.func @transform_13(%arg0: i32) -> (i32, i32) {
    %c0_i32 = arith.constant 0 : i32
    %c0_i32_0 = arith.constant 0 : i32
    %c0_i32_1 = arith.constant 0 : i32
    return %c0_i32, %c0_i32_0 : i32, i32
  }
  func.func @transform_14(%arg0: i32) -> (i32, i32, i32) {
    %c0_i32 = arith.constant 0 : i32
    %c0_i32_0 = arith.constant 0 : i32
    %c0_i32_1 = arith.constant 0 : i32
    %c0_i32_2 = arith.constant 0 : i32
    return %c0_i32, %c0_i32_0, %c0_i32_1 : i32, i32, i32
  }
  func.func @transform_15(%arg0: i32) -> (i32, i32) {
    %c0_i32 = arith.constant 0 : i32
    %c0_i32_0 = arith.constant 0 : i32
    %c0_i32_1 = arith.constant 0 : i32
    return %c0_i32, %c0_i32_0 : i32, i32
  }
}

</mosaic_0001>

<bundles_post_ra>
// kernel: falcon_attention_forward.1
= control target key start
LH: loop header
LB: loop body
LE: loop exit
PB: predicated region body
PF: predicated region fallthrough
CT: control target
= control target key end

     0   :  { %s4581_s0 = inlined_call_operand.vmem [shape: f32[16,128], index: 0, kind: input, shape index: {}]   ;;  %s4582_s1 = inlined_call_operand.vmem [shape: f32[16,32], index: 1, kind: input, shape index: {}]   ;;  %s4583_s2 = inlined_call_operand.vmem [shape: f32[16,32], index: 2, kind: input, shape index: {}]   ;;  %s4584_s3 = inlined_call_operand.vmem [shape: f32[16,16], index: 3, kind: input, shape index: {}]   ;;  %s4585_s4 = inlined_call_operand.vmem [shape: f32[4,128,32], index: 4, kind: input, shape index: {}]   ;;  %s4586_s5 = inlined_call_operand.vmem [shape: f32[4,1,32], index: 5, kind: input, shape index: {}]   ;;  %s4587_s6 = inlined_call_operand.vmem [shape: f32[4,128,32], index: 6, kind: input, shape index: {}]   ;;  %s4588_s7 = inlined_call_operand.vmem [shape: f32[4,1,32], index: 7, kind: input, shape index: {}]   ;;  %s4589_s8 = inlined_call_operand.vmem [shape: f32[128,32], index: 8, kind: input, shape index: {}]   ;;  %s4590_s9 = inlined_call_operand.vmem [shape: f32[1,32], index: 9, kind: input, shape index: {}]   ;;  %s4591_s10 = inlined_call_operand.vmem [shape: f32[128,32], index: 10, kind: input, shape index: {}]   ;;  %s4592_s11 = inlined_call_operand.vmem [shape: f32[1,32], index: 11, kind: input, shape index: {}]   ;;  %s4593_s12 = inlined_call_operand.vmem [shape: f32[128,32], index: 12, kind: input, shape index: {}]   ;;  %s4594_s13 = inlined_call_operand.vmem [shape: f32[1,32], index: 13, kind: input, shape index: {}]   ;;  %s4595_s14 = inlined_call_operand.vmem [shape: f32[4,32,128], index: 14, kind: input, shape index: {}]   ;;  %s4596_s15 = inlined_call_operand.hbm [shape: f32[16,128], index: 15, kind: output, shape index: {}]  }
   0x1   :  { %v59_v0 = vld [vmem:[%s4589_s8] sm:$0xff]  ;;  %v60_v1 = vld [vmem:[%s4589_s8 + $0x8] sm:$0xff]  ;;  %v61_v5 = vld [vmem:[%s4589_s8 + $0x10] sm:$0xff] }
   0x2   :  { %v157_v2 = vld [vmem:[%s4591_s10] sm:$0xff]  ;;  %v3184_v3 = vpack.c.bf16 %v60_v1, %v59_v0  ;;  %v158_v4 = vld [vmem:[%s4591_s10 + $0x8] sm:$0xff]  ;;  %v62_v6 = vld [vmem:[%s4589_s8 + $0x18] sm:$0xff] }
   0x3   :  { %v3216_v7 = vpack.c.bf16 %v158_v4, %v157_v2  ;;  %v3188_v8 = vpack.c.bf16 %v62_v6, %v61_v5  ;;  %v159_v9 = vld [vmem:[%s4591_s10 + $0x10] sm:$0xff]  ;;  %v160_v10 = vld [vmem:[%s4591_s10 + $0x18] sm:$0xff]  ;;  %v63_v11 = vld [vmem:[%s4589_s8 + $0x20] sm:$0xff] }
   0x4   :  { %3185 = vmatprep.subr.bf16.mxu0 %v3184_v3  ;;  %v3220_v12 = vpack.c.bf16 %v160_v10, %v159_v9  ;;  %v64_v13 = vld [vmem:[%s4589_s8 + $0x28] sm:$0xff]  ;;  %v161_v14 = vld [vmem:[%s4591_s10 + $0x20] sm:$0xff]  ;;  %v65_v18 = vld [vmem:[%s4589_s8 + $0x30] sm:$0xff] }
   0x5   :  { %v162_v15 = vld [vmem:[%s4591_s10 + $0x28] sm:$0xff]  ;;  %3217 = vmatprep.subr.bf16.mxu1 %v3216_v7  ;;  %3187 = vmatpush3.bf16.msra.mxu0 %v3184_v3  ;;  %v3192_v16 = vpack.c.bf16 %v64_v13, %v63_v11  ;;  %v66_v19 = vld [vmem:[%s4589_s8 + $0x38] sm:$0xff]  ;;  %v163_v20 = vld [vmem:[%s4591_s10 + $0x30] sm:$0xff] }
   0x6   :  { %3219 = vmatpush3.bf16.msra.mxu1 %v3216_v7  ;;  %3189 = vmatprep.subr.bf16.mxu0 %v3188_v8  ;;  %v3224_v17 = vpack.c.bf16 %v162_v15, %v161_v14  ;;  %v164_v21 = vld [vmem:[%s4591_s10 + $0x38] sm:$0xff]  ;;  %v3196_v22 = vpack.c.bf16 %v66_v19, %v65_v18  ;;  %v67_v24 = vld [vmem:[%s4589_s8 + $0x40] sm:$0xff]  ;;  %v68_v25 = vld [vmem:[%s4589_s8 + $0x48] sm:$0xff] }
   0x7   :  { %3221 = vmatprep.subr.bf16.mxu1 %v3220_v12  ;;  %v3228_v23 = vpack.c.bf16 %v164_v21, %v163_v20  ;;  %v3815_v26 = vld [vmem:[%s4581_s0] sm:$0xff]  ;;  %v166_v28 = vld [vmem:[%s4591_s10 + $0x48] sm:$0xff]  ;;  %v3200_v29 = vpack.c.bf16 %v68_v25, %v67_v24  ;;  %v69_v31 = vld [vmem:[%s4589_s8 + $0x50] sm:$0xff] }
   0x8   :  { %v165_v27 = vld [vmem:[%s4591_s10 + $0x40] sm:$0xff]  ;;  %2731 = vmatprep.mubr.f32.mxu0 %v3815_v26  ;;  %2766 = vmatprep.mubr.f32.mxu1 %v3815_v26  ;;  %v70_v32 = vld [vmem:[%s4589_s8 + $0x58] sm:$0xff]  ;;  %v167_v33 = vld [vmem:[%s4591_s10 + $0x50] sm:$0xff] }
   0x9   :  { %3191 = vmatpush3.bf16.msra.mxu0 %v3188_v8  ;;  %v3232_v30 = vpack.c.bf16 %v166_v28, %v165_v27  ;;  %v168_v34 = vld [vmem:[%s4591_s10 + $0x58] sm:$0xff]  ;;  %v3204_v35 = vpack.c.bf16 %v70_v32, %v69_v31  ;;  %v71_v37 = vld [vmem:[%s4589_s8 + $0x60] sm:$0xff]  ;;  %v72_v38 = vld [vmem:[%s4589_s8 + $0x68] sm:$0xff] }
   0xa   :  { %3223 = vmatpush3.bf16.msra.mxu1 %v3220_v12  ;;  %3193 = vmatprep.subr.bf16.mxu0 %v3192_v16  ;;  %v3236_v36 = vpack.c.bf16 %v168_v34, %v167_v33  ;;  %v169_v39 = vld [vmem:[%s4591_s10 + $0x60] sm:$0xff]  ;;  %v170_v40 = vld [vmem:[%s4591_s10 + $0x68] sm:$0xff]  ;;  %v3208_v41 = vpack.c.bf16 %v72_v38, %v71_v37  ;;  %v73_v43 = vld [vmem:[%s4589_s8 + $0x70] sm:$0xff] }
   0xb   :  { %3225 = vmatprep.subr.bf16.mxu1 %v3224_v17  ;;  %v3240_v42 = vpack.c.bf16 %v170_v40, %v169_v39  ;;  %v74_v44 = vld [vmem:[%s4589_s8 + $0x78] sm:$0xff]  ;;  %v171_v45 = vld [vmem:[%s4591_s10 + $0x70] sm:$0xff]  ;;  %v255_v49 = vld [vmem:[%s4593_s12] sm:$0xff] }
   0xc   :  { %v172_v46 = vld [vmem:[%s4591_s10 + $0x78] sm:$0xff]  ;;  %v3212_v47 = vpack.c.bf16 %v74_v44, %v73_v43  ;;  %v256_v50 = vld [vmem:[%s4593_s12 + $0x8] sm:$0xff]  ;;  %v359_v51 = vld [vmem:[%s4585_s4] sm:$0xff] }
   0xd   :  { %3195 = vmatpush3.bf16.msra.mxu0 %v3192_v16  ;;  %v3244_v48 = vpack.c.bf16 %v172_v46, %v171_v45  ;;  %v360_v52 = vld [vmem:[%s4585_s4 + $0x8] sm:$0xff] }
   0xe   :  { %3227 = vmatpush3.bf16.msra.mxu1 %v3224_v17  ;;  %3197 = vmatprep.subr.bf16.mxu0 %v3196_v22 }
   0xf   :  { %3229 = vmatprep.subr.bf16.mxu1 %v3228_v23 }
  0x11   :  { %3199 = vmatpush3.bf16.msra.mxu0 %v3196_v22 }
  0x12   :  { %3231 = vmatpush3.bf16.msra.mxu1 %v3228_v23  ;;  %3201 = vmatprep.subr.bf16.mxu0 %v3200_v29 }
  0x13   :  { %3233 = vmatprep.subr.bf16.mxu1 %v3232_v30 }
  0x15   :  { %3203 = vmatpush3.bf16.msra.mxu0 %v3200_v29 }
  0x16   :  { %3235 = vmatpush3.bf16.msra.mxu1 %v3232_v30  ;;  %3205 = vmatprep.subr.bf16.mxu0 %v3204_v35 }
  0x17   :  { %3237 = vmatprep.subr.bf16.mxu1 %v3236_v36 }
  0x19   :  { %3207 = vmatpush3.bf16.msra.mxu0 %v3204_v35 }
  0x1a   :  { %3239 = vmatpush3.bf16.msra.mxu1 %v3236_v36  ;;  %3209 = vmatprep.subr.bf16.mxu0 %v3208_v41 }
  0x1b   :  { %3241 = vmatprep.subr.bf16.mxu1 %v3240_v42 }
  0x1c   :  { %20 = vsyncpa [#allocation3], 0  ;;  %v3248_v53 = vpack.c.bf16 %v256_v50, %v255_v49  ;;  %v257_v54 = vld [vmem:[%s4593_s12 + $0x10] sm:$0xff]  ;;  %v258_v55 = vld [vmem:[%s4593_s12 + $0x18] sm:$0xff]  ;;  %v3280_v56 = vpack.c.bf16 %v360_v52, %v359_v51  ;;  %vm561_vm0 = vcmask 261120   ;;  %vm649_vm2 = vcmask 130048  }
  0x1d   :  { %3211 = vmatpush3.bf16.msra.mxu0 %v3208_v41  ;;  %v3882_v57 = vld [vmem:[%s4581_s0 + $0x8] sm:$0xff]  ;;  %v361_v58 = vld [vmem:[%s4585_s4 + $0x10] sm:$0xff]  ;;  %v362_v59 = vld [vmem:[%s4585_s4 + $0x18] sm:$0xff]  ;;  %v3252_v60 = vpack.c.bf16 %v258_v55, %v257_v54 }
  0x1e   :  { %3243 = vmatpush3.bf16.msra.mxu1 %v3240_v42  ;;  %3213 = vmatprep.subr.bf16.mxu0 %v3212_v47  ;;  %v259_v61 = vld [vmem:[%s4593_s12 + $0x20] sm:$0xff]  ;;  %v260_v62 = vld [vmem:[%s4593_s12 + $0x28] sm:$0xff]  ;;  %v3284_v63 = vpack.c.bf16 %v362_v59, %v361_v58  ;;  %v261_v3 = vld [vmem:[%s4593_s12 + $0x30] sm:$0xff] }
  0x1f   :  { %3245 = vmatprep.subr.bf16.mxu1 %v3244_v48  ;;  %v363_v0 = vld [vmem:[%s4585_s4 + $0x20] sm:$0xff]  ;;  %v364_v1 = vld [vmem:[%s4585_s4 + $0x28] sm:$0xff]  ;;  %v3256_v2 = vpack.c.bf16 %v260_v62, %v259_v61  ;;  %v262_v4 = vld [vmem:[%s4593_s12 + $0x38] sm:$0xff] }
  0x20   :  { %v3288_v5 = vpack.c.bf16 %v364_v1, %v363_v0  ;;  %v365_v6 = vld [vmem:[%s4585_s4 + $0x30] sm:$0xff]  ;;  %v366_v7 = vld [vmem:[%s4585_s4 + $0x38] sm:$0xff]  ;;  %v3260_v8 = vpack.c.bf16 %v262_v4, %v261_v3  ;;  %v263_v9 = vld [vmem:[%s4593_s12 + $0x40] sm:$0xff] }
  0x21   :  { %3215 = vmatpush3.bf16.msra.mxu0 %v3212_v47  ;;  %v264_v10 = vld [vmem:[%s4593_s12 + $0x48] sm:$0xff]  ;;  %v3292_v11 = vpack.c.bf16 %v366_v7, %v365_v6  ;;  %v367_v12 = vld [vmem:[%s4585_s4 + $0x40] sm:$0xff]  ;;  %v265_v15 = vld [vmem:[%s4593_s12 + $0x50] sm:$0xff] }
  0x22   :  { %3247 = vmatpush3.bf16.msra.mxu1 %v3244_v48  ;;  %3249 = vmatprep.subr.bf16.mxu0 %v3248_v53  ;;  %v368_v13 = vld [vmem:[%s4585_s4 + $0x48] sm:$0xff]  ;;  %v3264_v14 = vpack.c.bf16 %v264_v10, %v263_v9  ;;  %v266_v16 = vld [vmem:[%s4593_s12 + $0x58] sm:$0xff]  ;;  %v369_v18 = vld [vmem:[%s4585_s4 + $0x50] sm:$0xff] }
  0x23   :  { %3281 = vmatprep.subr.bf16.mxu1 %v3280_v56  ;;  %v3296_v17 = vpack.c.bf16 %v368_v13, %v367_v12  ;;  %v370_v19 = vld [vmem:[%s4585_s4 + $0x58] sm:$0xff]  ;;  %v3268_v20 = vpack.c.bf16 %v266_v16, %v265_v15  ;;  %v267_v21 = vld [vmem:[%s4593_s12 + $0x60] sm:$0xff]  ;;  %v268_v22 = vld [vmem:[%s4593_s12 + $0x68] sm:$0xff] }
  0x24   :  { %2732 = vmatmul.mubr.f32.vlgmr.msra.gmra.mrb[0].mxu0 %v3882_v57  ;;  %v3300_v23 = vpack.c.bf16 %v370_v19, %v369_v18  ;;  %v371_v24 = vld [vmem:[%s4585_s4 + $0x60] sm:$0xff]  ;;  %v372_v25 = vld [vmem:[%s4585_s4 + $0x68] sm:$0xff]  ;;  %v3272_v27 = vpack.c.bf16 %v268_v22, %v267_v21  ;;  %v269_v28 = vld [vmem:[%s4593_s12 + $0x70] sm:$0xff] }
  0x25   :  { %2767 = vmatmul.mubr.f32.vlgmr.msra.gmra.mrb[0].mxu1 %v3882_v57  ;;  %3251 = vmatpush3.bf16.msra.mxu0 %v3248_v53  ;;  %v270_v29 = vld [vmem:[%s4593_s12 + $0x78] sm:$0xff]  ;;  %v3304_v30 = vpack.c.bf16 %v372_v25, %v371_v24  ;;  %v373_v31 = vld [vmem:[%s4585_s4 + $0x70] sm:$0xff]  ;;  %v457_v34 = vld [vmem:[%s4587_s6] sm:$0xff] }
  0x26   :  { %3253 = vmatprep.subr.bf16.mxu0 %v3252_v60  ;;  %2801 = vmatprep.mubr.f32.mxu0 %v3815_v26  ;;  %v374_v32 = vld [vmem:[%s4585_s4 + $0x78] sm:$0xff]  ;;  %v3276_v33 = vpack.c.bf16 %v270_v29, %v269_v28  ;;  %v458_v35 = vld [vmem:[%s4587_s6 + $0x8] sm:$0xff]  ;;  %v459_v38 = vld [vmem:[%s4587_s6 + $0x10] sm:$0xff] }
  0x27   :  { %3283 = vmatpush3.bf16.msra.mxu1 %v3280_v56  ;;  %2836 = vmatprep.mubr.f32.mxu1 %v3815_v26  ;;  %v3308_v36 = vpack.c.bf16 %v374_v32, %v373_v31  ;;  %v3312_v37 = vpack.c.bf16 %v458_v35, %v457_v34  ;;  %v460_v39 = vld [vmem:[%s4587_s6 + $0x18] sm:$0xff]  ;;  %v461_v41 = vld [vmem:[%s4587_s6 + $0x20] sm:$0xff]  ;;  %v462_v42 = vld [vmem:[%s4587_s6 + $0x28] sm:$0xff] }
  0x28   :  { %3285 = vmatprep.subr.bf16.mxu1 %v3284_v63  ;;  %v3316_v40 = vpack.c.bf16 %v460_v39, %v459_v38  ;;  %v3320_v43 = vpack.c.bf16 %v462_v42, %v461_v41  ;;  %v463_v44 = vld [vmem:[%s4587_s6 + $0x30] sm:$0xff]  ;;  %v464_v45 = vld [vmem:[%s4587_s6 + $0x38] sm:$0xff]  ;;  %v465_v47 = vld [vmem:[%s4587_s6 + $0x40] sm:$0xff] }
  0x29   :  { %3255 = vmatpush3.bf16.msra.mxu0 %v3252_v60  ;;  %v3324_v46 = vpack.c.bf16 %v464_v45, %v463_v44  ;;  %v466_v48 = vld [vmem:[%s4587_s6 + $0x48] sm:$0xff]  ;;  %v467_v50 = vld [vmem:[%s4587_s6 + $0x50] sm:$0xff]  ;;  %v468_v51 = vld [vmem:[%s4587_s6 + $0x58] sm:$0xff] }
  0x2a   :  { %3257 = vmatprep.subr.bf16.mxu0 %v3256_v2  ;;  %v3328_v49 = vpack.c.bf16 %v466_v48, %v465_v47  ;;  %v3332_v52 = vpack.c.bf16 %v468_v51, %v467_v50  ;;  %v469_v53 = vld [vmem:[%s4587_s6 + $0x60] sm:$0xff]  ;;  %v470_v54 = vld [vmem:[%s4587_s6 + $0x68] sm:$0xff]  ;;  %v471_v56 = vld [vmem:[%s4587_s6 + $0x70] sm:$0xff] }
  0x2b   :  { %3287 = vmatpush3.bf16.msra.mxu1 %v3284_v63  ;;  %v3336_v55 = vpack.c.bf16 %v470_v54, %v469_v53  ;;  %v472_v58 = vld [vmem:[%s4587_s6 + $0x78] sm:$0xff]  ;;  %v2288_v60 = vld [vmem:[%s4590_s9] ss:$0 sm:$0xff]  ;;  %v4027_v62 = vld [vmem:[%s4582_s1 + $0x8] sm:$0xff] }
  0x2c   :  { %3289 = vmatprep.subr.bf16.mxu1 %v3288_v5  ;;  %v3340_v59 = vpack.c.bf16 %v472_v58, %v471_v56  ;;  %v2289_v61 = vld [vmem:[%s4592_s11] ss:$0 sm:$0xff]  ;;  %v4032_v1 = vld [vmem:[%s4583_s2 + $0x8] sm:$0xff]  ;;  %vm4056_vm1 = vmpackc.low %vm561_vm0, %vm561_vm0 }
  0x2d   :  { %3259 = vmatpush3.bf16.msra.mxu0 %v3256_v2  ;;  %v4037_v3 = vld [vmem:[%s4582_s1] sm:$0xff]  ;;  %v2300_v16 = vld [vmem:[%s4585_s4 + $0x88] sm:$0xff]  ;;  %v2301_v42 = vld [vmem:[%s4585_s4 + $0x90] sm:$0xff] }
  0x2e   :  { %3261 = vmatprep.subr.bf16.mxu0 %v3260_v8  ;;  %v4042_v7 = vld [vmem:[%s4583_s2] sm:$0xff]  ;;  %v2304_v48 = vld [vmem:[%s4585_s4 + $0xa8] sm:$0xff]  ;;  %v2305_v50 = vld [vmem:[%s4585_s4 + $0xb0] sm:$0xff]  ;;  %s3675_s2 = smov [#allocation2]  }
  0x2f   :  { %3291 = vmatpush3.bf16.msra.mxu1 %v3288_v5  ;;  %v2299_v15 = vld [vmem:[%s4585_s4 + $0x80] sm:$0xff]  ;;  %v2306_v51 = vld [vmem:[%s4585_s4 + $0xb8] sm:$0xff]  ;;  %v2308_v54 = vld [vmem:[%s4585_s4 + $0xc8] sm:$0xff]  ;;  %s2277_s29 = sshll.u32 %s3675_s2, 4  ;;  %s2278_s29 = int_to_ptr.vmem [resolvable:$true] %s2277_s29 }
  0x30   :  { %3293 = vmatprep.subr.bf16.mxu1 %v3292_v11  ;;  %v2290_v21 = vld [vmem:[%s4594_s13] ss:$0 sm:$0xff]  ;;  %v2309_v56 = vld [vmem:[%s4585_s4 + $0xd0] sm:$0xff]  ;;  %v2310_v58 = vld [vmem:[%s4585_s4 + $0xd8] sm:$0xff]  ;;  %p3656_p1 = scmp.lt.s32.totalorder %s2278_s29, %s2278_s29 }
  0x31   :  { %3263 = vmatpush3.bf16.msra.mxu0 %v3260_v8  ;;  %v2303_v47 = vld [vmem:[%s4585_s4 + $0xa0] sm:$0xff]  ;;  %v2416_v18 = vld [vmem:[%s4587_s6 + $0x188] sm:$0xff] }
  0x32   :  { %3265 = vmatprep.subr.bf16.mxu0 %v3264_v14  ;;  %v2307_v53 = vld [vmem:[%s4585_s4 + $0xc0] sm:$0xff] }
  0x33   :  { %3295 = vmatpush3.bf16.msra.mxu1 %v3292_v11 }
  0x34   :  { %3297 = vmatprep.subr.bf16.mxu1 %v3296_v17 }
  0x35   :  { %3267 = vmatpush3.bf16.msra.mxu0 %v3264_v14 }
  0x36   :  { %3269 = vmatprep.subr.bf16.mxu0 %v3268_v20 }
  0x37   :  { %3299 = vmatpush3.bf16.msra.mxu1 %v3296_v17 }
  0x38   :  { %3301 = vmatprep.subr.bf16.mxu1 %v3300_v23 }
  0x39   :  { %3271 = vmatpush3.bf16.msra.mxu0 %v3268_v20  ;;  %v3354_v20 = vpack.c.bf16 %v2300_v16, %v2299_v15  ;;  %v2318_v15 = vld [vmem:[%s4587_s6 + $0x88] sm:$0xff] }
  0x3a   :  { %3273 = vmatprep.subr.bf16.mxu0 %v3272_v27 }
  0x3b   :  { %3303 = vmatpush3.bf16.msra.mxu1 %v3300_v23 }
  0x3c   :  { %3305 = vmatprep.subr.bf16.mxu1 %v3304_v30 }
  0x3d   :  { %3275 = vmatpush3.bf16.msra.mxu0 %v3272_v27 }
  0x3e   :  { %3277 = vmatprep.subr.bf16.mxu0 %v3276_v33 }
  0x3f   :  { %3307 = vmatpush3.bf16.msra.mxu1 %v3304_v30  ;;  %v2291_v30 = vld [vmem:[%s4586_s5] ss:$0 sm:$0xff] }
  0x40   :  { %3309 = vmatprep.subr.bf16.mxu1 %v3308_v36 }
  0x41   :  { %3279 = vmatpush3.bf16.msra.mxu0 %v3276_v33  ;;  %v2292_v33 = vld [vmem:[%s4588_s7] ss:$0 sm:$0xff] }
  0x42   :  { %3313 = vmatprep.subr.bf16.mxu0 %v3312_v37 }
  0x43   :  { %3311 = vmatpush3.bf16.msra.mxu1 %v3308_v36 }
  0x44   :  { %2802 = vmatmul.mubr.f32.vlgmr.msra.gmra.mrb[2].mxu0 %v3882_v57 }
  0x45   :  { %3315 = vmatpush3.bf16.msra.mxu0 %v3312_v37  ;;  %2871 = vmatprep.mubr.f32.mxu0 %v3815_v26 }
  0x46   :  { %3317 = vmatprep.subr.bf16.mxu0 %v3316_v40  ;;  %2837 = vmatmul.mubr.f32.vlgmr.msra.gmra.mrb[2].mxu1 %v3882_v57 }
  0x49   :  { %3319 = vmatpush3.bf16.msra.mxu0 %v3316_v40 }
  0x4a   :  { %3321 = vmatprep.subr.bf16.mxu0 %v3320_v43 }
  0x4d   :  { %3323 = vmatpush3.bf16.msra.mxu0 %v3320_v43  ;;  %v2302_v43 = vld [vmem:[%s4585_s4 + $0x98] sm:$0xff] }
  0x4e   :  { %3325 = vmatprep.subr.bf16.mxu0 %v3324_v46 }
  0x51   :  { %3327 = vmatpush3.bf16.msra.mxu0 %v3324_v46  ;;  %v3358_v46 = vpack.c.bf16 %v2302_v43, %v2301_v42  ;;  %v2328_v42 = vld [vmem:[%s4587_s6 + $0xd8] sm:$0xff] }
  0x52   :  { %3329 = vmatprep.subr.bf16.mxu0 %v3328_v49 }
  0x55   :  { %3331 = vmatpush3.bf16.msra.mxu0 %v3328_v49  ;;  %v3362_v49 = vpack.c.bf16 %v2304_v48, %v2303_v47  ;;  %v2331_v47 = vld [vmem:[%s4587_s6 + $0xf0] sm:$0xff]  ;;  %v2332_v48 = vld [vmem:[%s4587_s6 + $0xf8] sm:$0xff] }
  0x56   :  { %3333 = vmatprep.subr.bf16.mxu0 %v3332_v52 }
  0x59   :  { %3335 = vmatpush3.bf16.msra.mxu0 %v3332_v52  ;;  %v3366_v52 = vpack.c.bf16 %v2306_v51, %v2305_v50  ;;  %v2349_v50 = vld [vmem:[%s4585_s4 + $0x100] sm:$0xff]  ;;  %v2350_v51 = vld [vmem:[%s4585_s4 + $0x108] sm:$0xff] }
  0x5a   :  { %3337 = vmatprep.subr.bf16.mxu0 %v3336_v55 }
  0x5d   :  { %3339 = vmatpush3.bf16.msra.mxu0 %v3336_v55  ;;  %v3370_v55 = vpack.c.bf16 %v2308_v54, %v2307_v53  ;;  %v2351_v53 = vld [vmem:[%s4585_s4 + $0x110] sm:$0xff]  ;;  %v2352_v54 = vld [vmem:[%s4585_s4 + $0x118] sm:$0xff] }
  0x5e   :  { %3341 = vmatprep.subr.bf16.mxu0 %v3340_v59 }
  0x61   :  { %3343 = vmatpush3.bf16.msra.mxu0 %v3340_v59  ;;  %v3374_v59 = vpack.c.bf16 %v2310_v58, %v2309_v56  ;;  %v2353_v56 = vld [vmem:[%s4585_s4 + $0x120] sm:$0xff]  ;;  %v2354_v58 = vld [vmem:[%s4585_s4 + $0x128] sm:$0xff] }
  0x64   :  { %2872 = vmatmul.mubr.f32.vlgmr.msra.gmra.mrb[4].mxu0 %v3882_v57 }
  0xf7   :  { %v2733_v63 = vpop.f32.mrb[0].mxu0 }
  0xf8   :  { %v154_v0 = vadd.f32 %v2733_v63, %v2288_v60  ;;  %v2768_v2 = vpop.f32.mrb[0].mxu1  ;;  %v148_v4 = vpop.f32.mrb[1].mxu0 }
  0xf9   :  { %v252_v5 = vadd.f32 %v2768_v2, %v2289_v61  ;;  %v149_v6 = vadd.f32 %v2288_v60, %v148_v4  ;;  %v246_v8 = vpop.f32.mrb[1].mxu1  ;;  %v2311_v60 = vld [vmem:[%s4585_s4 + $0xe0] sm:$0xff]  ;;  %v2314_v2 = vld [vmem:[%s4585_s4 + $0xf8] sm:$0xff] }
  0xfa   :  { %v354_v9 = vmul.f32 %v154_v0, %v4027_v62  ;;  %v247_v10 = vadd.f32 %v2289_v61, %v246_v8  ;;  %v2312_v61 = vld [vmem:[%s4585_s4 + $0xe8] sm:$0xff]  ;;  %v2313_v0 = vld [vmem:[%s4585_s4 + $0xf0] sm:$0xff] }
  0xfb   :  { %v356_v11 = vmul.f32 %v252_v5, %v4032_v1  ;;  %v353_v12 = vmul.f32 %v149_v6, %v4037_v3  ;;  %v3378_v63 = vpack.c.bf16 %v2312_v61, %v2311_v60  ;;  %v3382_v4 = vpack.c.bf16 %v2314_v2, %v2313_v0  ;;  %v4141_v5 = vld [vmem:[%s4584_s3] sm:$0xff]  ;;  %v4146_v8 = vld [vmem:[%s4584_s3 + $0x8] sm:$0xff]  ;;  %v2355_v60 = vld [vmem:[%s4585_s4 + $0x130] sm:$0xff] }
  0xfc   :  { %v355_v13 = vmul.f32 %v247_v10, %v4042_v7  ;;  %v2356_v61 = vld [vmem:[%s4585_s4 + $0x138] sm:$0xff]  ;;  %v2357_v0 = vld [vmem:[%s4585_s4 + $0x140] sm:$0xff]  ;;  %v2358_v2 = vld [vmem:[%s4585_s4 + $0x148] sm:$0xff] }
  0xfd   :  { %v358_v14 = vadd.f32 %v356_v11, %v354_v9 }
  0xfe   :  { %v357_v17 = vadd.f32 %v355_v13, %v353_v12 }
 0x100   :  { %v4060_v19 = vpack.c.bf16 %v358_v14, %v357_v17  ;;  %v2317_v14 = vld [vmem:[%s4587_s6 + $0x80] sm:$0xff] }
 0x101   :  { %v3386_v16 = vpack.c.bf16 %v2318_v15, %v2317_v14  ;;  %v2363_v14 = vld [vmem:[%s4585_s4 + $0x170] sm:$0xff]  ;;  %v2364_v15 = vld [vmem:[%s4585_s4 + $0x178] sm:$0xff] }
 0x102   :  { %3346 = vmatprep.subr.msk.bf16.mxu1 %vm4056_vm1, %v4060_v19 }
 0x103   :  { %3349 = vmatpush3.bf16.xpose.msk.msra.mxu1 %vm4056_vm1, %v4060_v19 }
 0x104   :  { %3355 = vmatprep.subr.bf16.mxu1 %v3354_v20 }
 0x117   :  { %v2803_v22 = vpop.f32.mrb[2].mxu0 }
 0x118   :  { %v350_v23 = vadd.f32 %v2803_v22, %v2290_v21  ;;  %v344_v24 = vpop.f32.mrb[3].mxu0 }
 0x119   :  { %v345_v25 = vadd.f32 %v2290_v21, %v344_v24  ;;  %v2838_v27 = vpop.f32.mrb[2].mxu1 }
 0x11a   :  { %v448_v28 = vpop.f32.mrb[3].mxu1  ;;  %v454_v31 = vadd.f32 %v2838_v27, %v2291_v30  ;;  %v2319_v27 = vld [vmem:[%s4587_s6 + $0x90] sm:$0xff] }
 0x11b   :  { %v4071_v29 = vpack.c.bf16 %v350_v23, %v345_v25  ;;  %v449_v32 = vadd.f32 %v2291_v30, %v448_v28  ;;  %v2320_v28 = vld [vmem:[%s4587_s6 + $0x98] sm:$0xff] }
 0x11c   :  { %v556_v35 = vmul.f32 %v454_v31, %v4027_v62  ;;  %v3390_v30 = vpack.c.bf16 %v2320_v28, %v2319_v27  ;;  %v2334_v28 = vld [vmem:[%s4588_s7 + $0x1] ss:$0 sm:$0xff] }
 0x11d   :  { %3351 = vmatprep.subr.bf16.mxu0 %v4071_v29  ;;  %v555_v38 = vmul.f32 %v449_v32, %v4037_v3  ;;  %v2321_v32 = vld [vmem:[%s4587_s6 + $0xa0] sm:$0xff] }
 0x11e   :  { %3353 = vmatpush3.bf16.msra.mxu0 %v4071_v29 }
 0x11f   :  { %3387 = vmatprep.subr.bf16.mxu0 %v3386_v16 }
 0x137   :  { %v2873_v34 = vpop.f32.mrb[4].mxu0 }
 0x138   :  { %v552_v36 = vadd.f32 %v2873_v34, %v2292_v33  ;;  %v546_v37 = vpop.f32.mrb[5].mxu0 }
 0x139   :  { %v547_v39 = vadd.f32 %v2292_v33, %v546_v37  ;;  %v2322_v33 = vld [vmem:[%s4587_s6 + $0xa8] sm:$0xff] }
 0x13a   :  { %v558_v40 = vmul.f32 %v552_v36, %v4032_v1  ;;  %v3394_v34 = vpack.c.bf16 %v2322_v33, %v2321_v32  ;;  %v2324_v36 = vld [vmem:[%s4587_s6 + $0xb8] sm:$0xff] }
 0x13b   :  { %v557_v41 = vmul.f32 %v547_v39, %v4042_v7  ;;  %v2326_v39 = vld [vmem:[%s4587_s6 + $0xc8] sm:$0xff] }
 0x13c   :  { %v560_v44 = vadd.f32 %v558_v40, %v556_v35  ;;  %v2323_v35 = vld [vmem:[%s4587_s6 + $0xb0] sm:$0xff] }
 0x13d   :  { %v559_v45 = vadd.f32 %v557_v41, %v555_v38  ;;  %v3398_v37 = vpack.c.bf16 %v2324_v36, %v2323_v35  ;;  %v2325_v38 = vld [vmem:[%s4587_s6 + $0xc0] sm:$0xff]  ;;  %v2327_v41 = vld [vmem:[%s4587_s6 + $0xd0] sm:$0xff] }
 0x13e   :  { %v3402_v40 = vpack.c.bf16 %v2326_v39, %v2325_v38  ;;  %v3406_v43 = vpack.c.bf16 %v2328_v42, %v2327_v41 }
 0x13f   :  { %2878 = vmatprep.mubr.msk.f32.mxu1 %vm561_vm0, %v559_v45  ;;  %v2330_v45 = vld [vmem:[%s4587_s6 + $0xe8] sm:$0xff] }
 0x140   :  { %2879 = vmatmul.mubr.msk.f32.vlgmr.msra.gmra.mrb[4].mxu1 %vm561_vm0, %v560_v44  ;;  %v2329_v44 = vld [vmem:[%s4587_s6 + $0xe0] sm:$0xff] }
 0x141   :  { %3357 = vmatpush3.bf16.msra.mxu1 %v3354_v20  ;;  %2920 = vmatprep.mubr.f32.mxu1 %v3815_v26 }
 0x142   :  { %3359 = vmatprep.subr.bf16.mxu1 %v3358_v46 }
 0x145   :  { %3361 = vmatpush3.bf16.msra.mxu1 %v3358_v46  ;;  %v3410_v46 = vpack.c.bf16 %v2330_v45, %v2329_v44 }
 0x146   :  { %3363 = vmatprep.subr.bf16.mxu1 %v3362_v49 }
 0x149   :  { %3365 = vmatpush3.bf16.msra.mxu1 %v3362_v49  ;;  %v3414_v49 = vpack.c.bf16 %v2332_v48, %v2331_v47 }
 0x14a   :  { %3367 = vmatprep.subr.bf16.mxu1 %v3366_v52 }
 0x14d   :  { %3369 = vmatpush3.bf16.msra.mxu1 %v3366_v52  ;;  %v3444_v52 = vpack.c.bf16 %v2350_v51, %v2349_v50 }
 0x14e   :  { %3371 = vmatprep.subr.bf16.mxu1 %v3370_v55 }
 0x151   :  { %3373 = vmatpush3.bf16.msra.mxu1 %v3370_v55  ;;  %v3448_v55 = vpack.c.bf16 %v2352_v54, %v2351_v53 }
 0x152   :  { %3375 = vmatprep.subr.bf16.mxu1 %v3374_v59 }
 0x155   :  { %3377 = vmatpush3.bf16.msra.mxu1 %v3374_v59  ;;  %v3452_v59 = vpack.c.bf16 %v2354_v58, %v2353_v56 }
 0x156   :  { %3379 = vmatprep.subr.bf16.mxu1 %v3378_v63 }
 0x159   :  { %3381 = vmatpush3.bf16.msra.mxu1 %v3378_v63  ;;  %v3456_v63 = vpack.c.bf16 %v2356_v61, %v2355_v60  ;;  %v2341_v60 = vld [vmem:[%s4595_s14 + $0x20] sm:$0xff]  ;;  %v2342_v61 = vld [vmem:[%s4595_s14 + $0x28] sm:$0xff] }
 0x15a   :  { %3383 = vmatprep.subr.bf16.mxu1 %v3382_v4 }
 0x15d   :  { %3385 = vmatpush3.bf16.msra.mxu1 %v3382_v4  ;;  %v3460_v4 = vpack.c.bf16 %v2358_v2, %v2357_v0  ;;  %v753_v2 = vld [vmem:[%s4595_s14] sm:$0xff] }
 0x15e   :  { %3420 = vmatprep.subr.msk.bf16.mxu1 %vm4056_vm1, %v4060_v19 }
 0x160   :  { %2921 = vmatmul.mubr.f32.vlgmr.msra.gmra.mrb[6].mxu1 %v3882_v57 }
 0x166   :  { %3423 = vmatpush3.bf16.xpose.msk.msra.mxu1 %vm4056_vm1, %v4060_v19 }
 0x167   :  { %3425 = vmatprep.subr.bf16.mxu1 %v4071_v29 }
 0x213   :  { %v2880_v6 = vpop.f32.mrb[4].mxu1 }
 0x214   :  { %v640_v9 = vpop.f32.mrb[5].mxu1  ;;  %v646_v11 = vadd.f32 %v2880_v6, %v4146_v8  ;;  %v2359_v6 = vld [vmem:[%s4585_s4 + $0x150] sm:$0xff] }
 0x215   :  { %v641_v10 = vadd.f32 %v640_v9, %v4141_v5  ;;  %v2360_v9 = vld [vmem:[%s4585_s4 + $0x158] sm:$0xff] }
 0x216   :  { %v653_v13 = vsel %vm649_vm2, %v646_v11, -inf }
 0x217   :  { %v650_v12 = vsel %vm649_vm2, %v641_v10, -inf }
 0x218   :  { %651 = vmax.xlane.f32.xlu0 %v650_v12  ;;  %v2362_v12 = vld [vmem:[%s4585_s4 + $0x168] sm:$0xff] }
 0x21c   :  { %654 = vmax.xlane.f32.xlu0 %v653_v13 }
 0x2a5   :  { %v652_v17 = vpop.xlane.xlu0 %651 }
 0x2a6   :  { %v656_v20 = vsub.f32 %v641_v10, %v652_v17  ;;  %v3464_v10 = vpack.c.bf16 %v2360_v9, %v2359_v6  ;;  %v2922_v17 = vpop.f32.mrb[6].mxu1 }
 0x2a8   :  { %v658_v21 = vmul.f32 1.442695, %v656_v20  ;;  %v848_v20 = vpop.f32.mrb[7].mxu1 }
 0x2a9   :  { %v655_v22 = vpop.xlane.xlu0 %654 }
 0x2aa   :  { %3617 = vpow2.f32 %v658_v21  ;;  %v657_v23 = vsub.f32 %v646_v11, %v655_v22  ;;  %v2361_v11 = vld [vmem:[%s4585_s4 + $0x160] sm:$0xff] }
 0x2ab   :  { %v3468_v13 = vpack.c.bf16 %v2362_v12, %v2361_v11 }
 0x2ac   :  { %v660_v24 = vmul.f32 1.442695, %v657_v23  ;;  %v2316_v23 = vld [vmem:[%s4586_s5 + $0x1] ss:$0 sm:$0xff] }
 0x2ad   :  { %v849_v27 = vadd.f32 %v2316_v23, %v848_v20  ;;  %v756_v20 = vld [vmem:[%s4595_s14 + $0x18] sm:$0xff] }
 0x2ae   :  { %3619 = vpow2.f32 %v660_v24  ;;  %v854_v24 = vadd.f32 %v2922_v17, %v2316_v23  ;;  %v755_v17 = vld [vmem:[%s4595_s14 + $0x10] sm:$0xff] }
 0x2af   :  { %v957_v35 = vmul.f32 %v849_v27, %v4037_v3 }
 0x2b0   :  { %v958_v32 = vmul.f32 %v854_v24, %v4027_v62 }
 0x2b4   :  { %v4158_v25 = vpop.eup %3617 }
 0x2b5   :  { %2885 = vmatprep.mubr.msk.f32.mxu0 %vm649_vm2, %v4158_v25  ;;  %v662_v56 = vsel %vm649_vm2, %v4158_v25, 0.0  ;;  %v2343_v25 = vld [vmem:[%s4595_s14 + $0x30] sm:$0xff] }
 0x2b8   :  { %v4168_v31 = vpop.eup %3619 }
 0x2b9   :  { %2886 = vmatmul.mubr.msk.f32.vlgmr.msra.gmra.mrb[6].mxu0 %vm649_vm2, %v4168_v31 }
 0x2ba   :  { %3389 = vmatpush3.bf16.msra.mxu0 %v3386_v16  ;;  %2955 = vmatprep.mubr.f32.mxu0 %v3815_v26  ;;  %v3472_v16 = vpack.c.bf16 %v2364_v15, %v2363_v14 }
 0x2bb   :  { %3391 = vmatprep.subr.bf16.mxu0 %v3390_v30 }
 0x2be   :  { %3393 = vmatpush3.bf16.msra.mxu0 %v3390_v30 }
 0x2bf   :  { %3395 = vmatprep.subr.bf16.mxu0 %v3394_v34 }
 0x2c2   :  { %3397 = vmatpush3.bf16.msra.mxu0 %v3394_v34 }
 0x2c3   :  { %3399 = vmatprep.subr.bf16.mxu0 %v3398_v37 }
 0x2c6   :  { %3401 = vmatpush3.bf16.msra.mxu0 %v3398_v37 }
 0x2c7   :  { %3403 = vmatprep.subr.bf16.mxu0 %v3402_v40 }
 0x2ca   :  { %3405 = vmatpush3.bf16.msra.mxu0 %v3402_v40 }
 0x2cb   :  { %3407 = vmatprep.subr.bf16.mxu0 %v3406_v43 }
 0x2ce   :  { %3409 = vmatpush3.bf16.msra.mxu0 %v3406_v43 }
 0x2cf   :  { %3411 = vmatprep.subr.bf16.mxu0 %v3410_v46 }
 0x2d2   :  { %3413 = vmatpush3.bf16.msra.mxu0 %v3410_v46 }
 0x2d3   :  { %3415 = vmatprep.subr.bf16.mxu0 %v3414_v49 }
 0x2d6   :  { %3417 = vmatpush3.bf16.msra.mxu0 %v3414_v49 }
 0x2d7   :  { %3445 = vmatprep.subr.bf16.mxu0 %v3444_v52 }
 0x2d9   :  { %2956 = vmatmul.mubr.f32.vlgmr.msra.gmra.mrb[8].mxu0 %v3882_v57 }
 0x2da   :  { %3447 = vmatpush3.bf16.msra.mxu0 %v3444_v52  ;;  %3026 = vmatprep.mubr.f32.mxu0 %v3815_v26 }
 0x2db   :  { %3449 = vmatprep.subr.bf16.mxu0 %v3448_v55 }
 0x2de   :  { %3451 = vmatpush3.bf16.msra.mxu0 %v3448_v55 }
 0x2df   :  { %3453 = vmatprep.subr.bf16.mxu0 %v3452_v59 }
 0x2e2   :  { %3455 = vmatpush3.bf16.msra.mxu0 %v3452_v59  ;;  %v665_v59 = vsel %vm649_vm2, %v4168_v31, 0.0  ;;  %v2344_v31 = vld [vmem:[%s4595_s14 + $0x38] sm:$0xff] }
 0x2e3   :  { %3457 = vmatprep.subr.bf16.mxu0 %v3456_v63  ;;  %v3432_v0 = vpack.c.bf16 %v2344_v31, %v2343_v25 }
 0x2e6   :  { %3459 = vmatpush3.bf16.msra.mxu0 %v3456_v63  ;;  %v3428_v63 = vpack.c.bf16 %v2342_v61, %v2341_v60  ;;  %v2384_v61 = vld [vmem:[%s4588_s7 + $0x2] ss:$0 sm:$0xff] }
 0x2e7   :  { %3461 = vmatprep.subr.bf16.mxu0 %v3460_v4 }
 0x2ea   :  { %3463 = vmatpush3.bf16.msra.mxu0 %v3460_v4  ;;  %v754_v4 = vld [vmem:[%s4595_s14 + $0x8] sm:$0xff] }
 0x2eb   :  { %3465 = vmatprep.subr.bf16.mxu0 %v3464_v10  ;;  %v3436_v6 = vpack.c.bf16 %v754_v4, %v753_v2 }
 0x2ee   :  { %3467 = vmatpush3.bf16.msra.mxu0 %v3464_v10 }
 0x2ef   :  { %3469 = vmatprep.subr.bf16.mxu0 %v3468_v13 }
 0x2f2   :  { %3471 = vmatpush3.bf16.msra.mxu0 %v3468_v13 }
 0x2f3   :  { %3473 = vmatprep.subr.bf16.mxu0 %v3472_v16 }
 0x2f6   :  { %3475 = vmatpush3.bf16.msra.mxu0 %v3472_v16 }
 0x2f7   :  { %3510 = vmatprep.subr.msk.bf16.mxu0 %vm4056_vm1, %v4060_v19 }
 0x2f9   :  { %3027 = vmatmul.mubr.f32.vlgmr.msra.gmra.mrb[10].mxu0 %v3882_v57 }
 0x2ff   :  { %3513 = vmatpush3.bf16.xpose.msk.msra.mxu0 %vm4056_vm1, %v4060_v19 }
 0x300   :  { %3515 = vmatprep.subr.bf16.mxu0 %v4071_v29 }
 0x38c   :  { %v4267_v21 = vpop.f32.mrb[6].mxu0 }
 0x38d   :  { %v4269_v22 = vpop.f32.mrb[7].mxu0 }
 0x3ac   :  { %v2957_v30 = vpop.f32.mrb[8].mxu0 }
 0x3ad   :  { %v954_v33 = vadd.f32 %v2957_v30, %v2334_v28  ;;  %v948_v34 = vpop.f32.mrb[9].mxu0 }
 0x3ae   :  { %v949_v36 = vadd.f32 %v2334_v28, %v948_v34  ;;  %v2367_v34 = vld [vmem:[%s4587_s6 + $0x100] sm:$0xff] }
 0x3af   :  { %v960_v37 = vmul.f32 %v954_v33, %v4032_v1 }
 0x3b0   :  { %v959_v38 = vmul.f32 %v949_v36, %v4042_v7 }
 0x3b1   :  { %v962_v39 = vadd.f32 %v960_v37, %v958_v32  ;;  %v3440_v32 = vpack.c.bf16 %v756_v20, %v755_v17  ;;  %v2397_v17 = vld [vmem:[%s4585_s4 + $0x180] sm:$0xff]  ;;  %v2398_v20 = vld [vmem:[%s4585_s4 + $0x188] sm:$0xff] }
 0x3b2   :  { %v961_v40 = vadd.f32 %v959_v38, %v957_v35  ;;  %v2368_v35 = vld [vmem:[%s4587_s6 + $0x108] sm:$0xff]  ;;  %v2370_v38 = vld [vmem:[%s4587_s6 + $0x118] sm:$0xff] }
 0x3b3   :  { %v3476_v36 = vpack.c.bf16 %v2368_v35, %v2367_v34  ;;  %v2399_v34 = vld [vmem:[%s4585_s4 + $0x190] sm:$0xff]  ;;  %v2400_v35 = vld [vmem:[%s4585_s4 + $0x198] sm:$0xff] }
 0x3b4   :  { %2962 = vmatprep.mubr.msk.f32.mxu1 %vm561_vm0, %v961_v40 }
 0x3b5   :  { %2963 = vmatmul.mubr.msk.f32.vlgmr.msra.gmra.mrb[8].mxu1 %vm561_vm0, %v962_v39 }
 0x3b6   :  { %3427 = vmatpush3.bf16.msra.mxu1 %v4071_v29 }
 0x3b7   :  { %3429 = vmatprep.subr.bf16.mxu1 %v3428_v63 }
 0x3cc   :  { %v4314_v9 = vpop.f32.mrb[10].mxu0 }
 0x3cd   :  { %v4316_v10 = vpop.f32.mrb[11].mxu0 }
 0x488   :  { %v2964_v41 = vpop.f32.mrb[8].mxu1 }
 0x489   :  { %v1035_v42 = vpop.f32.mrb[9].mxu1  ;;  %v1041_v44 = vadd.f32 %v2964_v41, %v4146_v8  ;;  %v2371_v41 = vld [vmem:[%s4587_s6 + $0x120] sm:$0xff] }
 0x48a   :  { %v1036_v43 = vadd.f32 %v1035_v42, %v4141_v5  ;;  %v2372_v42 = vld [vmem:[%s4587_s6 + $0x128] sm:$0xff] }
 0x48b   :  { %v1047_v46 = vsel %vm649_vm2, %v1041_v44, -inf }
 0x48c   :  { %v1044_v45 = vsel %vm649_vm2, %v1036_v43, -inf }
 0x48d   :  { %1045 = vmax.xlane.f32.xlu1 %v1044_v45 }
 0x491   :  { %1048 = vmax.xlane.f32.xlu1 %v1047_v46  ;;  %v2375_v46 = vld [vmem:[%s4587_s6 + $0x140] sm:$0xff] }
 0x51a   :  { %v1046_v47 = vpop.xlane.xlu1 %1045 }
 0x51b   :  { %v1050_v48 = vsub.f32 %v1036_v43, %v1046_v47  ;;  %v3484_v43 = vpack.c.bf16 %v2372_v42, %v2371_v41  ;;  %v2402_v41 = vld [vmem:[%s4585_s4 + $0x1a8] sm:$0xff]  ;;  %v4424_v42 = vld [vmem:[%s4581_s0] sm:$0xff] }
 0x51d   :  { %v1052_v49 = vmul.f32 1.442695, %v1050_v48  ;;  %v2377_v48 = vld [vmem:[%s4587_s6 + $0x150] sm:$0xff] }
 0x51e   :  { %v1049_v50 = vpop.xlane.xlu1 %1048 }
 0x51f   :  { %3621 = vpow2.f32 %v1052_v49  ;;  %v1051_v51 = vsub.f32 %v1041_v44, %v1049_v50  ;;  %v2374_v44 = vld [vmem:[%s4587_s6 + $0x138] sm:$0xff] }
 0x520   :  { %v2378_v49 = vld [vmem:[%s4587_s6 + $0x158] sm:$0xff] }
 0x521   :  { %v1054_v52 = vmul.f32 1.442695, %v1051_v51  ;;  %v3496_v50 = vpack.c.bf16 %v2378_v49, %v2377_v48  ;;  %v2379_v51 = vld [vmem:[%s4587_s6 + $0x160] sm:$0xff]  ;;  %v2407_v48 = vld [vmem:[%s4585_s4 + $0x1d0] sm:$0xff]  ;;  %v2408_v49 = vld [vmem:[%s4585_s4 + $0x1d8] sm:$0xff] }
 0x523   :  { %3623 = vpow2.f32 %v1054_v52  ;;  %v2380_v52 = vld [vmem:[%s4587_s6 + $0x168] sm:$0xff] }
 0x529   :  { %v3622_v53 = vpop.eup %3621 }
 0x52a   :  { %2969 = vmatprep.mubr.msk.f32.mxu1 %vm649_vm2, %v3622_v53  ;;  %v1056_v54 = vsel %vm649_vm2, %v3622_v53, 0.0  ;;  %v3500_v53 = vpack.c.bf16 %v2380_v52, %v2379_v51  ;;  %v2391_v51 = vld [vmem:[%s4595_s14 + $0x40] sm:$0xff]  ;;  %v2392_v52 = vld [vmem:[%s4595_s14 + $0x48] sm:$0xff] }
 0x52b   :  { %1057 = vadd.xlane.f32.xlu0 %v1056_v54  ;;  %v2381_v54 = vld [vmem:[%s4587_s6 + $0x170] sm:$0xff] }
 0x52d   :  { %v3624_v55 = vpop.eup %3623 }
 0x52e   :  { %2970 = vmatmul.mubr.msk.f32.vlgmr.msra.gmra.mrb[10].mxu1 %vm649_vm2, %v3624_v55  ;;  %v1059_v58 = vsel %vm649_vm2, %v3624_v55, 0.0  ;;  %v2382_v55 = vld [vmem:[%s4587_s6 + $0x178] sm:$0xff] }
 0x52f   :  { %663 = vadd.xlane.f32.xlu0 %v662_v56  ;;  %1060 = vadd.xlane.f32.xlu1 %v1059_v58  ;;  %v3504_v56 = vpack.c.bf16 %v2382_v55, %v2381_v54  ;;  %v2366_v58 = vld [vmem:[%s4586_s5 + $0x2] ss:$0 sm:$0xff]  ;;  %v2410_v54 = vld [vmem:[%s4585_s4 + $0x1e8] sm:$0xff]  ;;  %v3518_v55 = vpack.c.bf16 %v2392_v52, %v2391_v51 }
 0x530   :  { %3431 = vmatpush3.bf16.msra.mxu1 %v3428_v63  ;;  %v1406_v60 = vadd.f32 %v2366_v58, %v4316_v10 }
 0x531   :  { %3433 = vmatprep.subr.bf16.mxu1 %v3432_v0 }
 0x532   :  { %v1514_v2 = vmul.f32 %v1406_v60, %v4037_v3 }
 0x533   :  { %666 = vadd.xlane.f32.xlu1 %v665_v59  ;;  %v1411_v59 = vadd.f32 %v4314_v9, %v2366_v58  ;;  %v2411_v58 = vld [vmem:[%s4585_s4 + $0x1f0] sm:$0xff] }
 0x534   :  { %3435 = vmatpush3.bf16.msra.mxu1 %v3432_v0 }
 0x535   :  { %3437 = vmatprep.subr.bf16.mxu1 %v3436_v6  ;;  %v1515_v25 = vmul.f32 %v1411_v59, %v4027_v62  ;;  %v2412_v59 = vld [vmem:[%s4585_s4 + $0x1f8] sm:$0xff] }
 0x536   :  { %v3554_v60 = vpack.c.bf16 %v2412_v59, %v2411_v58 }
 0x5b8   :  { %v1058_v11 = vpop.xlane.xlu0 %1057 }
 0x5b9   :  { %3625 = vrcp.f32 %v1058_v11 }
 0x5bc   :  { %v664_v12 = vpop.xlane.xlu0 %663  ;;  %v1061_v13 = vpop.xlane.xlu1 %1060 }
 0x5bd   :  { %3627 = vrcp.f32 %v664_v12 }
 0x5be   :  { %3629 = vrcp.f32 %v1061_v13 }
 0x5c0   :  { %v667_v14 = vpop.xlane.xlu1 %666 }
 0x5c1   :  { %3631 = vrcp.f32 %v667_v14 }
 0x5c3   :  { %v3626_v15 = vpop.eup %3625 }
 0x5c7   :  { %v3628_v23 = vpop.eup %3627 }
 0x5c8   :  { %v3630_v27 = vpop.eup %3629  ;;  %v750_v33 = vmul.f32 %v3628_v23, %v4269_v22  ;;  %v2369_v22 = vld [vmem:[%s4587_s6 + $0x110] sm:$0xff]  ;;  %v3526_v23 = vpack.c.bf16 %v2398_v20, %v2397_v17  ;;  %v2420_v17 = vld [vmem:[%s4587_s6 + $0x1a8] sm:$0xff] }
 0x5c9   :  { %v3480_v40 = vpack.c.bf16 %v2370_v38, %v2369_v22  ;;  %v3530_v38 = vpack.c.bf16 %v2400_v35, %v2399_v34  ;;  %v2426_v34 = vld [vmem:[%s4587_s6 + $0x1d8] sm:$0xff] }
 0x5cb   :  { %v3632_v37 = vpop.eup %3631 }
 0x5cc   :  { %v752_v39 = vmul.f32 %v3632_v37, %v4267_v21  ;;  %v2373_v21 = vld [vmem:[%s4587_s6 + $0x130] sm:$0xff] }
 0x5cd   :  { %v3488_v45 = vpack.c.bf16 %v2374_v44, %v2373_v21  ;;  %v2403_v21 = vld [vmem:[%s4585_s4 + $0x1b0] sm:$0xff]  ;;  %v2404_v44 = vld [vmem:[%s4585_s4 + $0x1b8] sm:$0xff] }
 0x601   :  { %v2971_v16 = vpop.f32.mrb[10].mxu1 }
 0x602   :  { %v1134_v24 = vpop.f32.mrb[11].mxu1  ;;  %v1146_v30 = vmul.f32 %v3630_v27, %v2971_v16 }
 0x603   :  { %v1144_v28 = vmul.f32 %v3626_v15, %v1134_v24 }
 0x605   :  { %2980 = vmatprep.mubr.msk.f32.mxu1 %vm561_vm0, %v1144_v28 }
 0x606   :  { %2981 = vmatmul.mubr.msk.f32.vlgmr.msra.gmra.mrb[12].mxu1 %vm561_vm0, %v1146_v30 }
 0x607   :  { %3439 = vmatpush3.bf16.msra.mxu1 %v3436_v6  ;;  %2991 = vmatprep.mubr.msk.f32.mxu1 %vm561_vm0, %v750_v33 }
 0x608   :  { %3441 = vmatprep.subr.bf16.mxu1 %v3440_v32 }
 0x60b   :  { %3443 = vmatpush3.bf16.msra.mxu1 %v3440_v32 }
 0x60c   :  { %3477 = vmatprep.subr.bf16.mxu1 %v3476_v36 }
 0x60e   :  { %2992 = vmatmul.mubr.msk.f32.vlgmr.msra.gmra.mrb[12].mxu1 %vm561_vm0, %v752_v39 }
 0x60f   :  { %3479 = vmatpush3.bf16.msra.mxu1 %v3476_v36  ;;  %3061 = vmatprep.mubr.f32.mxu1 %v3815_v26  ;;  %v2376_v26 = vld [vmem:[%s4587_s6 + $0x148] sm:$0xff] }
 0x610   :  { %3481 = vmatprep.subr.bf16.mxu1 %v3480_v40  ;;  %v3492_v47 = vpack.c.bf16 %v2376_v26, %v2375_v46  ;;  %v2405_v46 = vld [vmem:[%s4585_s4 + $0x1c0] sm:$0xff]  ;;  %v2406_v26 = vld [vmem:[%s4585_s4 + $0x1c8] sm:$0xff] }
 0x613   :  { %3483 = vmatpush3.bf16.msra.mxu1 %v3480_v40  ;;  %v2401_v40 = vld [vmem:[%s4585_s4 + $0x1a0] sm:$0xff] }
 0x614   :  { %3485 = vmatprep.subr.bf16.mxu1 %v3484_v43 }
 0x617   :  { %3487 = vmatpush3.bf16.msra.mxu1 %v3484_v43  ;;  %v3534_v43 = vpack.c.bf16 %v2402_v41, %v2401_v40 }
 0x618   :  { %3489 = vmatprep.subr.bf16.mxu1 %v3488_v45 }
 0x61b   :  { %3491 = vmatpush3.bf16.msra.mxu1 %v3488_v45  ;;  %v3538_v45 = vpack.c.bf16 %v2404_v44, %v2403_v21 }
 0x61c   :  { %3493 = vmatprep.subr.bf16.mxu1 %v3492_v47 }
 0x61f   :  { %3495 = vmatpush3.bf16.msra.mxu1 %v3492_v47  ;;  %v3542_v47 = vpack.c.bf16 %v2406_v26, %v2405_v46 }
 0x620   :  { %3497 = vmatprep.subr.bf16.mxu1 %v3496_v50 }
 0x623   :  { %3499 = vmatpush3.bf16.msra.mxu1 %v3496_v50  ;;  %v3546_v50 = vpack.c.bf16 %v2408_v49, %v2407_v48 }
 0x624   :  { %3501 = vmatprep.subr.bf16.mxu1 %v3500_v53 }
 0x627   :  { %3503 = vmatpush3.bf16.msra.mxu1 %v3500_v53  ;;  %v2409_v53 = vld [vmem:[%s4585_s4 + $0x1e0] sm:$0xff] }
 0x628   :  { %3505 = vmatprep.subr.bf16.mxu1 %v3504_v56 }
 0x62b   :  { %3507 = vmatpush3.bf16.msra.mxu1 %v3504_v56  ;;  %v3550_v56 = vpack.c.bf16 %v2410_v54, %v2409_v53 }
 0x62c   :  { %3519 = vmatprep.subr.bf16.mxu1 %v3518_v55 }
 0x62e   :  { %3062 = vmatmul.mubr.f32.vlgmr.msra.gmra.mrb[14].mxu1 %v3882_v57 }
 0x62f   :  { %3521 = vmatpush3.bf16.msra.mxu1 %v3518_v55 }
 0x701   :  { %v3063_v63 = vpop.f32.mrb[14].mxu1 }
 0x702   :  { %v1511_v31 = vadd.f32 %v3063_v63, %v2384_v61  ;;  %v1505_v0 = vpop.f32.mrb[15].mxu1  ;;  %v2393_v63 = vld [vmem:[%s4595_s14 + $0x50] sm:$0xff] }
 0x703   :  { %v1506_v57 = vadd.f32 %v2384_v61, %v1505_v0  ;;  %v4469_v61 = vld [vmem:[%s4581_s0 + $0x8] sm:$0xff]  ;;  %v2415_v0 = vld [vmem:[%s4587_s6 + $0x180] sm:$0xff] }
 0x704   :  { %v1517_v4 = vmul.f32 %v1511_v31, %v4032_v1 }
 0x705   :  { %v1516_v6 = vmul.f32 %v1506_v57, %v4042_v7 }
 0x706   :  { %v1519_v11 = vadd.f32 %v1517_v4, %v1515_v25  ;;  %v2394_v25 = vld [vmem:[%s4595_s14 + $0x58] sm:$0xff] }
 0x707   :  { %v1518_v9 = vadd.f32 %v1516_v6, %v1514_v2  ;;  %v3522_v31 = vpack.c.bf16 %v2394_v25, %v2393_v63  ;;  %v2417_v6 = vld [vmem:[%s4587_s6 + $0x190] sm:$0xff] }
 0x709   :  { %3068 = vmatprep.mubr.msk.f32.mxu0 %vm561_vm0, %v1518_v9  ;;  %3523 = vmatprep.subr.bf16.mxu1 %v3522_v31 }
 0x70a   :  { %3069 = vmatmul.mubr.msk.f32.vlgmr.msra.gmra.mrb[12].mxu0 %vm561_vm0, %v1519_v11  ;;  %3525 = vmatpush3.bf16.msra.mxu1 %v3522_v31  ;;  %v2418_v11 = vld [vmem:[%s4587_s6 + $0x198] sm:$0xff] }
 0x70b   :  { %3517 = vmatpush3.bf16.msra.mxu0 %v4071_v29 }
 0x70c   :  { %3527 = vmatprep.subr.bf16.mxu0 %v3526_v23 }
 0x7dd   :  { %v3070_v10 = vpop.f32.mrb[12].mxu0 }
 0x7de   :  { %v1598_v12 = vadd.f32 %v3070_v10, %v4146_v8  ;;  %v1592_v13 = vpop.f32.mrb[13].mxu0 }
 0x7df   :  { %v1593_v14 = vadd.f32 %v1592_v13, %v4141_v5 }
 0x7e0   :  { %v1604_v15 = vsel %vm649_vm2, %v1598_v12, -inf }
 0x7e1   :  { %1605 = vmax.xlane.f32.xlu1 %v1604_v15  ;;  %v1601_v16 = vsel %vm649_vm2, %v1593_v14, -inf  ;;  %v3562_v15 = vpack.c.bf16 %v2418_v11, %v2417_v6 }
 0x7e2   :  { %1602 = vmax.xlane.f32.xlu0 %v1601_v16  ;;  %v2419_v16 = vld [vmem:[%s4587_s6 + $0x1a0] sm:$0xff] }
 0x7e3   :  { %v3566_v20 = vpack.c.bf16 %v2420_v17, %v2419_v16 }
 0x86e   :  { %v1606_v24 = vpop.xlane.xlu1 %1605 }
 0x86f   :  { %v1608_v27 = vsub.f32 %v1598_v12, %v1606_v24  ;;  %v1603_v28 = vpop.xlane.xlu0 %1602  ;;  %v2422_v24 = vld [vmem:[%s4587_s6 + $0x1b8] sm:$0xff] }
 0x870   :  { %v1607_v30 = vsub.f32 %v1593_v14, %v1603_v28  ;;  %v2423_v28 = vld [vmem:[%s4587_s6 + $0x1c0] sm:$0xff] }
 0x871   :  { %v1611_v32 = vmul.f32 1.442695, %v1608_v27 }
 0x872   :  { %v1609_v33 = vmul.f32 1.442695, %v1607_v30  ;;  %v2424_v30 = vld [vmem:[%s4587_s6 + $0x1c8] sm:$0xff] }
 0x873   :  { %3633 = vpow2.f32 %v1611_v32  ;;  %v3574_v32 = vpack.c.bf16 %v2424_v30, %v2423_v28 }
 0x874   :  { %3635 = vpow2.f32 %v1609_v33  ;;  %v2425_v33 = vld [vmem:[%s4587_s6 + $0x1d0] sm:$0xff] }
 0x875   :  { %v3578_v35 = vpack.c.bf16 %v2426_v34, %v2425_v33 }
 0x87d   :  { %v3634_v36 = vpop.eup %3633 }
 0x87e   :  { %v3636_v37 = vpop.eup %3635  ;;  %v1616_v22 = vsel %vm649_vm2, %v3634_v36, 0.0 }
 0x87f   :  { %1617 = vadd.xlane.f32.xlu1 %v1616_v22  ;;  %3075 = vmatprep.mubr.msk.f32.mxu0 %vm649_vm2, %v3636_v37  ;;  %v1613_v39 = vsel %vm649_vm2, %v3636_v37, 0.0  ;;  %v2428_v37 = vld [vmem:[%s4587_s6 + $0x1e8] sm:$0xff] }
 0x880   :  { %3076 = vmatmul.mubr.msk.f32.vlgmr.msra.gmra.mrb[14].mxu0 %vm649_vm2, %v3634_v36  ;;  %1614 = vadd.xlane.f32.xlu0 %v1613_v39  ;;  %v2427_v36 = vld [vmem:[%s4587_s6 + $0x1e0] sm:$0xff]  ;;  %v2430_v39 = vld [vmem:[%s4587_s6 + $0x1f8] sm:$0xff] }
 0x881   :  { %3529 = vmatpush3.bf16.msra.mxu0 %v3526_v23  ;;  %3121 = vmatprep.mubr.f32.mxu0 %v4424_v42  ;;  %v2421_v23 = vld [vmem:[%s4587_s6 + $0x1b0] sm:$0xff]  ;;  %v3582_v22 = vpack.c.bf16 %v2428_v37, %v2427_v36 }
 0x882   :  { %3531 = vmatprep.subr.bf16.mxu0 %v3530_v38  ;;  %v3570_v27 = vpack.c.bf16 %v2422_v24, %v2421_v23 }
 0x885   :  { %3533 = vmatpush3.bf16.msra.mxu0 %v3530_v38  ;;  %v2429_v38 = vld [vmem:[%s4587_s6 + $0x1f0] sm:$0xff] }
 0x886   :  { %3535 = vmatprep.subr.bf16.mxu0 %v3534_v43  ;;  %v3586_v40 = vpack.c.bf16 %v2430_v39, %v2429_v38 }
 0x889   :  { %3537 = vmatpush3.bf16.msra.mxu0 %v3534_v43  ;;  %v2414_v43 = vld [vmem:[%s4586_s5 + $0x3] ss:$0 sm:$0xff] }
 0x88a   :  { %3539 = vmatprep.subr.bf16.mxu0 %v3538_v45 }
 0x88d   :  { %3541 = vmatpush3.bf16.msra.mxu0 %v3538_v45  ;;  %v2432_v45 = vld [vmem:[%s4588_s7 + $0x3] ss:$0 sm:$0xff] }
 0x88e   :  { %3543 = vmatprep.subr.bf16.mxu0 %v3542_v47 }
 0x891   :  { %3545 = vmatpush3.bf16.msra.mxu0 %v3542_v47 }
 0x892   :  { %3547 = vmatprep.subr.bf16.mxu0 %v3546_v50 }
 0x895   :  { %3549 = vmatpush3.bf16.msra.mxu0 %v3546_v50 }
 0x896   :  { %3551 = vmatprep.subr.bf16.mxu0 %v3550_v56 }
 0x899   :  { %3553 = vmatpush3.bf16.msra.mxu0 %v3550_v56 }
 0x89a   :  { %3555 = vmatprep.subr.bf16.mxu0 %v3554_v60 }
 0x89d   :  { %3557 = vmatpush3.bf16.msra.mxu0 %v3554_v60 }
 0x89e   :  { %3592 = vmatprep.subr.msk.bf16.mxu0 %vm4056_vm1, %v4060_v19 }
 0x8a0   :  { %3122 = vmatmul.mubr.f32.vlgmr.msra.gmra.mrb[16].mxu0 %v4469_v61 }
 0x8a6   :  { %3595 = vmatpush3.bf16.xpose.msk.msra.mxu0 %vm4056_vm1, %v4060_v19  ;;  %v3558_v19 = vpack.c.bf16 %v2416_v18, %v2415_v0  ;;  %v2439_v0 = vld [vmem:[%s4595_s14 + $0x60] sm:$0xff]  ;;  %v2440_v18 = vld [vmem:[%s4595_s14 + $0x68] sm:$0xff] }
 0x8a8   :  { %3559 = vmatprep.subr.bf16.mxu1 %v3558_v19 }
 0x90c   :  { %v1618_v57 = vpop.xlane.xlu1 %1617 }
 0x90d   :  { %v1615_v2 = vpop.xlane.xlu0 %1614 }
 0x90e   :  { %3637 = vrcp.f32 %v1615_v2  ;;  %v2441_v2 = vld [vmem:[%s4595_s14 + $0x70] sm:$0xff] }
 0x90f   :  { %3639 = vrcp.f32 %v1618_v57  ;;  %v2442_v57 = vld [vmem:[%s4595_s14 + $0x78] sm:$0xff]  ;;  %s3651_s14 = scalar_lea.vmem %s2278_s29, 256 }
 0x910   :  { %p3652_p0 = scmp.ne.s32.totalorder %s2278_s29, %s3651_s14  ;;  %p3657_p2 = scmp.lt.s32.totalorder %s3651_s14, %s3651_s14 }
 0x912   :  { %p3658_p3 = por %p3657_p2, %p3656_p1 }
 0x914   :  { %p3659_p4 = pnand %p3658_p3, %p3652_p0 }
 0x918   :  { %v3638_v9 = vpop.eup %3637 }
 0x919   :  { %v3640_v12 = vpop.eup %3639 }
 0x953   :  { %v3077_v4 = vpop.f32.mrb[14].mxu0 }
 0x954   :  { %v1691_v10 = vpop.f32.mrb[15].mxu0  ;;  %v1703_v14 = vmul.f32 %v3640_v12, %v3077_v4  ;;  %v3604_v4 = vpack.c.bf16 %v2442_v57, %v2441_v2 }
 0x955   :  { %v1701_v13 = vmul.f32 %v3638_v9, %v1691_v10 }
 0x957   :  { %3086 = vmatprep.mubr.msk.f32.mxu1 %vm561_vm0, %v1701_v13 }
 0x958   :  { %3087 = vmatmul.mubr.msk.f32.vlgmr.msra.gmra.mrb[12].mxu1 %vm561_vm0, %v1703_v14 }
 0x959   :  { %3561 = vmatpush3.bf16.msra.mxu1 %v3558_v19  ;;  %3156 = vmatprep.mubr.f32.mxu1 %v4424_v42  ;;  %v3600_v19 = vpack.c.bf16 %v2440_v18, %v2439_v0 }
 0x95a   :  { %3563 = vmatprep.subr.bf16.mxu1 %v3562_v15 }
 0x95d   :  { %3565 = vmatpush3.bf16.msra.mxu1 %v3562_v15 }
 0x95e   :  { %3567 = vmatprep.subr.bf16.mxu1 %v3566_v20 }
 0x961   :  { %3569 = vmatpush3.bf16.msra.mxu1 %v3566_v20 }
 0x962   :  { %3571 = vmatprep.subr.bf16.mxu1 %v3570_v27 }
 0x965   :  { %3573 = vmatpush3.bf16.msra.mxu1 %v3570_v27 }
 0x966   :  { %3575 = vmatprep.subr.bf16.mxu1 %v3574_v32 }
 0x969   :  { %3577 = vmatpush3.bf16.msra.mxu1 %v3574_v32 }
 0x96a   :  { %3579 = vmatprep.subr.bf16.mxu1 %v3578_v35 }
 0x96d   :  { %3581 = vmatpush3.bf16.msra.mxu1 %v3578_v35 }
 0x96e   :  { %3583 = vmatprep.subr.bf16.mxu1 %v3582_v22 }
 0x971   :  { %3585 = vmatpush3.bf16.msra.mxu1 %v3582_v22 }
 0x972   :  { %3587 = vmatprep.subr.bf16.mxu1 %v3586_v40 }
 0x973   :  { %v3123_v41 = vpop.f32.mrb[16].mxu0 }
 0x974   :  { %v1883_v42 = vpop.f32.mrb[17].mxu0  ;;  %v1889_v21 = vadd.f32 %v3123_v41, %v2414_v43 }
 0x975   :  { %3589 = vmatpush3.bf16.msra.mxu1 %v3586_v40  ;;  %v1884_v44 = vadd.f32 %v2414_v43, %v1883_v42 }
 0x976   :  { %3597 = vmatprep.subr.bf16.mxu1 %v4071_v29  ;;  %v1993_v26 = vmul.f32 %v1889_v21, %v4027_v62 }
 0x977   :  { %v1992_v49 = vmul.f32 %v1884_v44, %v4037_v3 }
 0x978   :  { %3157 = vmatmul.mubr.f32.vlgmr.msra.gmra.mrb[16].mxu1 %v4469_v61 }
 0x979   :  { %3599 = vmatpush3.bf16.msra.mxu1 %v4071_v29 }
 0x97a   :  { %3601 = vmatprep.subr.bf16.mxu1 %v3600_v19 }
 0xa4b   :  { %v3158_v46 = vpop.f32.mrb[16].mxu1 }
 0xa4c   :  { %v1989_v47 = vadd.f32 %v3158_v46, %v2432_v45  ;;  %v1983_v48 = vpop.f32.mrb[17].mxu1 }
 0xa4d   :  { %v1984_v50 = vadd.f32 %v2432_v45, %v1983_v48 }
 0xa4e   :  { %v1995_v29 = vmul.f32 %v1989_v47, %v4032_v1 }
 0xa4f   :  { %v1994_v51 = vmul.f32 %v1984_v50, %v4042_v7 }
 0xa50   :  { %v1997_v52 = vadd.f32 %v1995_v29, %v1993_v26 }
 0xa51   :  { %v1996_v53 = vadd.f32 %v1994_v51, %v1992_v49 }
 0xa53   :  { %3163 = vmatprep.mubr.msk.f32.mxu0 %vm561_vm0, %v1996_v53 }
 0xa54   :  { %3164 = vmatmul.mubr.msk.f32.vlgmr.msra.gmra.mrb[18].mxu0 %vm561_vm0, %v1997_v52 }
 0xb27   :  { %v3165_v54 = vpop.f32.mrb[18].mxu0 }
 0xb28   :  { %v2076_v55 = vadd.f32 %v3165_v54, %v4146_v8  ;;  %v2070_v56 = vpop.f32.mrb[19].mxu0 }
 0xb29   :  { %v2071_v62 = vadd.f32 %v2070_v56, %v4141_v5 }
 0xb2a   :  { %v2082_v58 = vsel %vm649_vm2, %v2076_v55, -inf }
 0xb2b   :  { %2083 = vmax.xlane.f32.xlu1 %v2082_v58  ;;  %v2079_v3 = vsel %vm649_vm2, %v2071_v62, -inf }
 0xb2c   :  { %2080 = vmax.xlane.f32.xlu0 %v2079_v3 }
 0xbb8   :  { %v2084_v1 = vpop.xlane.xlu1 %2083 }
 0xbb9   :  { %v2086_v7 = vsub.f32 %v2076_v55, %v2084_v1  ;;  %v2081_v59 = vpop.xlane.xlu0 %2080 }
 0xbba   :  { %v2085_v60 = vsub.f32 %v2071_v62, %v2081_v59 }
 0xbbb   :  { %v2089_v61 = vmul.f32 1.442695, %v2086_v7 }
 0xbbc   :  { %v2087_v63 = vmul.f32 1.442695, %v2085_v60 }
 0xbbd   :  { %3641 = vpow2.f32 %v2089_v61 }
 0xbbe   :  { %3643 = vpow2.f32 %v2087_v63 }
 0xbc7   :  { %v3642_v25 = vpop.eup %3641 }
 0xbc8   :  { %v3644_v31 = vpop.eup %3643  ;;  %v2094_v8 = vsel %vm649_vm2, %v3642_v25, 0.0 }
 0xbc9   :  { %2095 = vadd.xlane.f32.xlu1 %v2094_v8  ;;  %3170 = vmatprep.mubr.msk.f32.mxu1 %vm649_vm2, %v3644_v31  ;;  %v2091_v5 = vsel %vm649_vm2, %v3644_v31, 0.0 }
 0xbca   :  { %3171 = vmatmul.mubr.msk.f32.vlgmr.msra.gmra.mrb[18].mxu1 %vm649_vm2, %v3642_v25  ;;  %2092 = vadd.xlane.f32.xlu0 %v2091_v5 }
 0xbcb   :  { %3603 = vmatpush3.bf16.msra.mxu1 %v3600_v19 }
 0xbcc   :  { %3605 = vmatprep.subr.bf16.mxu1 %v3604_v4 }
 0xbcf   :  { %3607 = vmatpush3.bf16.msra.mxu1 %v3604_v4 }
 0xc56   :  { %v2096_v11 = vpop.xlane.xlu1 %2095 }
 0xc57   :  { %v2093_v6 = vpop.xlane.xlu0 %2092 }
 0xc58   :  { %3645 = vrcp.f32 %v2093_v6 }
 0xc59   :  { %3647 = vrcp.f32 %v2096_v11 }
 0xc62   :  { %v3646_v10 = vpop.eup %3645 }
 0xc63   :  { %v3648_v13 = vpop.eup %3647 }
 0xc9d   :  { %v3172_v9 = vpop.f32.mrb[18].mxu1 }
 0xc9e   :  { %v2169_v12 = vpop.f32.mrb[19].mxu1  ;;  %v2181_v15 = vmul.f32 %v3648_v13, %v3172_v9 }
 0xc9f   :  { %v2179_v14 = vmul.f32 %v3646_v10, %v2169_v12 }
 0xca1   :  { %3181 = vmatprep.mubr.msk.f32.mxu1 %vm561_vm0, %v2179_v14 }
 0xca2   :  { %3182 = vmatmul.mubr.msk.f32.vlgmr.msra.gmra.mrb[12].mxu1 %vm561_vm0, %v2181_v15 }
 0xd75   :  { %v3183_v16 = vpop.f32.mrb[12].mxu1 }
 0xd76   :  { %2271 = vst [vmem:[#allocation2 + $0x8] sm:$0xff] %v3183_v16  ;;  %v2259_v17 = vpop.f32.mrb[13].mxu1 }
 0xd77   :  { %2270 = vst [vmem:[#allocation2] sm:$0xff] %v2259_v17 }
 0xd78   :  { %3662 = shalt.err (!%p3659_p4)
}
 0xd79   :  { %s3663_s16 = scalar_lea.hbm %s4596_s15, 256 }
 0xd7a   :  { %p3664_p5 = scmp.ne.s32.totalorder %s4596_s15, %s3663_s16  ;;  %p3667_p6 = scmp.lt.u32.totalorder %s3663_s16, %s4596_s15 }
 0xd7c   :  { %p3669_p7 = pnand %p3667_p6, %p3664_p5 }
 0xd7e   :  { %3672 = shalt.err (!%p3669_p7)
}
 0xd7f   :  { %s3676_s19 = smov 128   ;;  %s3677_s20 = smov 8  }
 0xd80   :  { %2283 = dma.vmem_to_hbm [thread:$0]  %s2278_s29, 256, %s4596_s15, [#allocation3], %s3676_s19, %s3676_s19, %s3677_s20  }
 0xd81   :  { %3673 = dma.done.wait [#allocation3], 256  }
 0xd82   :  { %3674 = vsyncadd [#allocation3], 4294967040 }
 0xd83   :  { %2287 = vsyncpa [#allocation3], 1 }

</bundles_post_ra>
